<compile_context>
chip_gen: v6e
topology: v6e:2x2x1
jax: 0.10.0
libtpu: 0.0.40
codegen_flags: <defaults>
</compile_context>

<pallas_src>
import numpy as np
import jax
import jax.numpy as jnp
from jax.experimental import pallas as pl
from jax.experimental.pallas import tpu as pltpu


# ----------------------------------------------------------------------- parameter setup
def _bell_np(x, m, s):
    return np.exp(-((x - m) / s) ** 2 / 2)


def build_lenia_params(K, kernels, X, Y, dt):
    """Mirror of Lenia_Classic.__init__ (frequency-domain kernels) plus the block-complex
    DFT matrices and per-kernel coefficient rows used by the Pallas kernel."""
    assert X == Y, "square grid assumed (single DFT matrix)"
    N = X
    nk = len(kernels)
    midX, midY = X // 2, Y // 2
    ii = np.arange(-midX, midX, dtype=np.float64).reshape(-1, 1)
    jj = np.arange(-midY, midY, dtype=np.float64).reshape(1, -1)
    dist = np.sqrt(ii ** 2 + jj ** 2)          # == np.linalg.norm(np.ogrid[...]) trick

    fkr_list, fki_list = [], []
    for k in kernels:
        b = np.asarray(k['b'], dtype=np.float32)
        D = (dist / K * len(b) / k['r']).astype(np.float32)
        idx = np.minimum(D.astype(np.int32), len(b) - 1)       # torch .int() truncation
        Kmat = (D < len(b)).astype(np.float32) * b[idx] * _bell_np(D % 1.0, 0.5, 0.15)
        Kmat = Kmat / Kmat.sum()
        fk = np.fft.fft2(np.fft.fftshift(Kmat))
        fkr_list.append(np.real(fk).astype(np.float32))
        fki_list.append(np.imag(fk).astype(np.float32))
    fkr = np.stack(fkr_list)                   # (nk, N, N) raw spectra (reference only)
    fki = np.stack(fki_list)

    # DFT matrix F = Fr + i*Fi and the two block matrices used inside the kernel.
    n = np.arange(N)
    W = np.exp(-2j * np.pi * np.outer(n, n) / N)
    Fr = np.real(W).astype(np.float32)
    Fi = np.imag(W).astype(np.float32)
    FH = np.concatenate([Fr, Fi], axis=1)                      # (N, 2N)   [Fr | Fi]
    FB = np.block([[Fr, -Fi], [Fi, Fr]]).astype(np.float32)    # (2N, 2N)  [[Fr,-Fi],[Fi,Fr]]

    inv_n2 = 1.0 / float(N * N)   # fold ifft2 normalisation into the kernel spectra
    FKR_w = np.concatenate([fkr[j] * inv_n2 for j in range(nk)], axis=1)   # (N, nk*N)
    FKI_w = np.concatenate([fki[j] * inv_n2 for j in range(nk)], axis=1)

    m_w = np.repeat(np.asarray([k['m'] for k in kernels], np.float32), N)[None, :]
    invs_w = np.repeat(np.asarray([1.0 / k['s'] for k in kernels], np.float32), N)[None, :]
    hdt_w = np.repeat(np.asarray([dt * k['h'] for k in kernels], np.float32), N)[None, :]

    return dict(
        FH=jnp.asarray(FH, jnp.float32),
        FB=jnp.asarray(FB, jnp.float32),
        FKR_w=jnp.asarray(FKR_w, jnp.float32),
        FKI_w=jnp.asarray(FKI_w, jnp.float32),
        m_w=jnp.asarray(m_w, jnp.float32),
        invs_w=jnp.asarray(invs_w, jnp.float32),
        hdt_w=jnp.asarray(hdt_w, jnp.float32),
        fkr=jnp.asarray(fkr, jnp.float32),      # raw spectra for the pure-JAX reference
        fki=jnp.asarray(fki, jnp.float32),
    )


# -------------------------------------------------------------------------- Pallas kernel
def make_lenia_kernel(C, N, kernels, mode):
    nk = len(kernels)

    def dotf(a, b):
        # f32 operands, f32 accumulation; HIGHEST keeps the DFT exact enough for the
        # highly sensitive bell() growth (|dG/dU| ~ 2/s).
        return jnp.dot(a, b,
                       precision=jax.lax.Precision.HIGHEST,
                       preferred_element_type=jnp.float32)

    def kernel(x_ref, fh_ref, fb_ref, fkr_ref, fki_ref,
               m_ref, invs_ref, hdt_ref, out_ref):
        FH = fh_ref[...]                       # (N, 2N)   [Fr | Fi]
        FB = fb_ref[...]                       # (2N, 2N)  [[Fr,-Fi],[Fi,Fr]]
        x = x_ref[...]                         # (C*N, N) f32, channel c on rows c*N:(c+1)*N

        # ---------------- forward fft2 of all channels: 2 batched matmuls ----------------
        # stage 1 (axis-1 DFT, tall batch over channels): S row-block c = [Xc*Fr | Xc*Fi]
        S = dotf(x, FH)                                          # (C*N, 2N)
        # block shuffle tall -> wide: column block c = [Xc*Fr ; Xc*Fi]
        vcols = []
        for c in range(C):
            Sc = S[c * N:(c + 1) * N, :]
            vcols.append(jnp.concatenate([Sc[:, :N], Sc[:, N:]], axis=0))
        Vw = jnp.concatenate(vcols, axis=1)                      # (2N, C*N)
        # stage 2 (axis-0 DFT, wide batch): FX column block c = [fxr_c ; fxi_c]
        FX = dotf(FB, Vw)                                        # (2N, C*N)

        # ------------- frequency-domain product, all Lenia kernels at once ---------------
        fxr_sel = jnp.concatenate(
            [FX[:N, k['c0'] * N:(k['c0'] + 1) * N] for k in kernels], axis=1)   # (N, nk*N)
        fxi_sel = jnp.concatenate(
            [FX[N:, k['c0'] * N:(k['c0'] + 1) * N] for k in kernels], axis=1)
        FKr = fkr_ref[...]                                       # (N, nk*N)  (1/N^2 folded)
        FKi = fki_ref[...]
        Yr = FKr * fxr_sel - FKi * fxi_sel
        Yi = FKr * fxi_sel + FKi * fxr_sel

        # -------------- inverse fft2 (real part), all kernels: 2 batched matmuls ---------
        # block shuffle wide -> tall: row block j = [Yr_j | Yi_j]
        yrows = []
        for j in range(nk):
            yrows.append(jnp.concatenate(
                [Yr[:, j * N:(j + 1) * N], Yi[:, j * N:(j + 1) * N]], axis=1))
        Yt = jnp.concatenate(yrows, axis=0)                      # (nk*N, 2N)
        # stage 1 (axis-1 inverse, tall batch): RI row block j = [R_j | I_j] = Y_j @ conj(F)
        RI = dotf(Yt, FB)                                        # (nk*N, 2N)
        # block shuffle tall -> wide: column block j = [R_j ; I_j]
        rcols = []
        for j in range(nk):
            RIj = RI[j * N:(j + 1) * N, :]
            rcols.append(jnp.concatenate([RIj[:, :N], RIj[:, N:]], axis=0))
        RIw = jnp.concatenate(rcols, axis=1)                     # (2N, nk*N)
        # stage 2 (axis-0 inverse, wide batch): U column block j = Re(ifft2(fk_j * fx_{c0}))
        U = dotf(FH, RIw)                                        # (N, nk*N)

        # ------------- growth + per-target-channel accumulation + clip (lane-dense) ------
        t = (U - m_ref[...]) * invs_ref[...]
        contrib = hdt_ref[...] * (2.0 * jnp.exp(-0.5 * t * t) - 1.0)   # dt * h_j * G_j

        outs = []
        for c1 in range(C):
            acc = x[c1 * N:(c1 + 1) * N, :]
            for j, k in enumerate(kernels):
                if k['c1'] == c1:
                    acc = acc + contrib[:, j * N:(j + 1) * N]
            if mode == 'soft':
                outs.append(1.0 / (1.0 + jnp.exp(-4.0 * (acc - 0.5))))
            else:  # 'hard'
                outs.append(jnp.clip(acc, 0.0, 1.0))
        out_ref[...] = jnp.concatenate(outs, axis=1)             # (N, C*N), single store

    return kernel


# -------------------------------------------------------------------------------- wrapper
def make_lenia_step(C, N, kernels, mode, params):
    kern = make_lenia_kernel(C, N, kernels, mode)
    vmem = pl.BlockSpec(memory_space=pltpu.MemorySpace.VMEM)
    call = pl.pallas_call(
        kern,
        out_shape=jax.ShapeDtypeStruct((N, C * N), jnp.float32),
        in_specs=[vmem] * 8,
        out_specs=vmem,
    )
    FH, FB = params['FH'], params['FB']
    FKR_w, FKI_w = params['FKR_w'], params['FKI_w']
    m_w, invs_w, hdt_w = params['m_w'], params['invs_w'], params['hdt_w']

    def step(x_hwc):
        # module layout (H, W, C) -> kernel layout: channels stacked along rows (C*N, N)
        x_tall = jnp.transpose(x_hwc, (2, 0, 1)).astype(jnp.float32).reshape(C * N, N)
        out_wide = call(x_tall, FH, FB, FKR_w, FKI_w, m_w, invs_w, hdt_w)
        # (N, C*N): column block c = channel c  ->  module layout (N, N, C)
        return jnp.transpose(out_wide.reshape(N, C, N), (0, 2, 1))

    return jax.jit(step)


# ------------------------------------------------------------------- pure-JAX reference
def lenia_reference(x_hwc, kernels, fkr, fki, C, dt, mode='soft'):
    def bell(x, m, s):
        return jnp.exp(-((x - m) / s) ** 2 / 2)
    fXs = [jnp.fft.fft2(x_hwc[:, :, i]) for i in range(x_hwc.shape[-1])]
    fks = [fkr[j] + 1j * fki[j] for j in range(len(kernels))]
    Us = [jnp.real(jnp.fft.ifft2(fk * fXs[k['c0']])) for fk, k in zip(fks, kernels)]
    Gs = [bell(U, k['m'], k['s']) * 2 - 1 for U, k in zip(Us, kernels)]
    Hs = jnp.stack(
        [sum(k['h'] * G if k['c1'] == c1 else jnp.zeros_like(G)
             for G, k in zip(Gs, kernels)) for c1 in range(C)],
        axis=-1)
    xn = x_hwc + dt * Hs
    if mode == 'soft':
        return 1.0 / (1.0 + jnp.exp(-4.0 * (xn - 0.5)))
    return jnp.clip(xn, 0.0, 1.0)


# ------------------------------------------------------------------------------------ main
if __name__ == "__main__":
    C, X, Y = 3, 16, 16
    K_scale = 4.0
    dt = 0.1
    mode = 'soft'
    kernels = [
        {'b': [1.0],             'r': 1.0, 'm': 0.15, 's': 0.10, 'h': 0.10, 'c0': 0, 'c1': 0},
        {'b': [1.0, 0.5],        'r': 1.0, 'm': 0.25, 's': 0.12, 'h': 0.20, 'c0': 0, 'c1': 1},
        {'b': [0.5, 1.0],        'r': 0.8, 'm': 0.20, 's': 0.09, 'h': 0.30, 'c0': 1, 'c1': 0},
        {'b': [1.0],             'r': 1.2, 'm': 0.30, 's': 0.15, 'h': 0.25, 'c0': 1, 'c1': 2},
        {'b': [1.0, 0.25, 0.75], 'r': 1.0, 'm': 0.22, 's': 0.11, 'h': 0.15, 'c0': 2, 'c1': 1},
        {'b': [1.0],             'r': 0.9, 'm': 0.18, 's': 0.08, 'h': 0.20, 'c0': 2, 'c1': 2},
    ]

    params = build_lenia_params(K_scale, kernels, X, Y, dt)
    step = make_lenia_step(C, X, kernels, mode, params)

    key = jax.random.PRNGKey(0)
    x = jax.random.uniform(key, (X, Y, C), dtype=jnp.float32)   # module layout (H, W, C)

    y = step(x)
    y = jax.block_until_ready(y)
    assert y.shape == (X, Y, C)

    y_ref = lenia_reference(x, kernels, params['fkr'], params['fki'], C, dt, mode)
    np.testing.assert_allclose(np.asarray(y), np.asarray(y_ref), atol=1e-3, rtol=1e-3)

    print("KERNEL_OK")
</pallas_src>

<mosaic_0001>
module attributes {stable_mosaic.version = 11 : i64} {
  func.func @kernel(%arg0: memref<48x16xf32, #tpu.memory_space<vmem>>, %arg1: memref<16x32xf32, #tpu.memory_space<vmem>>, %arg2: memref<32x32xf32, #tpu.memory_space<vmem>>, %arg3: memref<16x96xf32, #tpu.memory_space<vmem>>, %arg4: memref<16x96xf32, #tpu.memory_space<vmem>>, %arg5: memref<1x96xf32, #tpu.memory_space<vmem>>, %arg6: memref<1x96xf32, #tpu.memory_space<vmem>>, %arg7: memref<1x96xf32, #tpu.memory_space<vmem>>, %arg8: memref<16x48xf32, #tpu.memory_space<vmem>>) attributes {dimension_semantics = [], scalar_prefetch = 0 : i64, scratch_operands = 0 : i64, tpu.core_type = #tpu.core_type<tc>} {
    %c0 = arith.constant 0 : index
    %c0_0 = arith.constant 0 : index
    %0 = vector.load %arg1[%c0, %c0_0] : memref<16x32xf32, #tpu.memory_space<vmem>>, vector<16x32xf32>
    %c0_1 = arith.constant 0 : index
    %c0_2 = arith.constant 0 : index
    %1 = vector.load %arg2[%c0_1, %c0_2] : memref<32x32xf32, #tpu.memory_space<vmem>>, vector<32x32xf32>
    %c0_3 = arith.constant 0 : index
    %c0_4 = arith.constant 0 : index
    %2 = vector.load %arg0[%c0_3, %c0_4] : memref<48x16xf32, #tpu.memory_space<vmem>>, vector<48x16xf32>
    %cst = arith.constant dense<0.000000e+00> : vector<48x32xf32>
    %3 = tpu.matmul %2, %0, %cst {dimension_numbers = #tpu.dot_dimension_numbers<[1], [0], [0], [1], [0, 0, 1, 1], [], []>, precision = #tpu.contract_precision<fp32>} : vector<48x16xf32>, vector<16x32xf32>, vector<48x32xf32> -> vector<48x32xf32>
    %4 = vector.extract_strided_slice %3 {offsets = [0, 0], sizes = [16, 32], strides = [1, 1]} : vector<48x32xf32> to vector<16x32xf32>
    %5 = vector.extract_strided_slice %4 {offsets = [0, 0], sizes = [16, 16], strides = [1, 1]} : vector<16x32xf32> to vector<16x16xf32>
    %6 = vector.extract_strided_slice %4 {offsets = [0, 16], sizes = [16, 16], strides = [1, 1]} : vector<16x32xf32> to vector<16x16xf32>
    %7 = tpu.concatenate %5, %6 in 0 : vector<16x16xf32>, vector<16x16xf32> -> vector<32x16xf32>
    %8 = vector.extract_strided_slice %3 {offsets = [16, 0], sizes = [16, 32], strides = [1, 1]} : vector<48x32xf32> to vector<16x32xf32>
    %9 = vector.extract_strided_slice %8 {offsets = [0, 0], sizes = [16, 16], strides = [1, 1]} : vector<16x32xf32> to vector<16x16xf32>
    %10 = vector.extract_strided_slice %8 {offsets = [0, 16], sizes = [16, 16], strides = [1, 1]} : vector<16x32xf32> to vector<16x16xf32>
    %11 = tpu.concatenate %9, %10 in 0 : vector<16x16xf32>, vector<16x16xf32> -> vector<32x16xf32>
    %12 = vector.extract_strided_slice %3 {offsets = [32, 0], sizes = [16, 32], strides = [1, 1]} : vector<48x32xf32> to vector<16x32xf32>
    %13 = vector.extract_strided_slice %12 {offsets = [0, 0], sizes = [16, 16], strides = [1, 1]} : vector<16x32xf32> to vector<16x16xf32>
    %14 = vector.extract_strided_slice %12 {offsets = [0, 16], sizes = [16, 16], strides = [1, 1]} : vector<16x32xf32> to vector<16x16xf32>
    %15 = tpu.concatenate %13, %14 in 0 : vector<16x16xf32>, vector<16x16xf32> -> vector<32x16xf32>
    %16 = tpu.concatenate %7, %11, %15 in 1 : vector<32x16xf32>, vector<32x16xf32>, vector<32x16xf32> -> vector<32x48xf32>
    %cst_5 = arith.constant dense<0.000000e+00> : vector<32x48xf32>
    %17 = tpu.matmul %1, %16, %cst_5 {dimension_numbers = #tpu.dot_dimension_numbers<[1], [0], [0], [1], [0, 0, 1, 1], [], []>, precision = #tpu.contract_precision<fp32>} : vector<32x32xf32>, vector<32x48xf32>, vector<32x48xf32> -> vector<32x48xf32>
    %18 = vector.extract_strided_slice %17 {offsets = [0, 0], sizes = [16, 16], strides = [1, 1]} : vector<32x48xf32> to vector<16x16xf32>
    %19 = vector.extract_strided_slice %17 {offsets = [0, 0], sizes = [16, 16], strides = [1, 1]} : vector<32x48xf32> to vector<16x16xf32>
    %20 = vector.extract_strided_slice %17 {offsets = [0, 16], sizes = [16, 16], strides = [1, 1]} : vector<32x48xf32> to vector<16x16xf32>
    %21 = vector.extract_strided_slice %17 {offsets = [0, 16], sizes = [16, 16], strides = [1, 1]} : vector<32x48xf32> to vector<16x16xf32>
    %22 = vector.extract_strided_slice %17 {offsets = [0, 32], sizes = [16, 16], strides = [1, 1]} : vector<32x48xf32> to vector<16x16xf32>
    %23 = vector.extract_strided_slice %17 {offsets = [0, 32], sizes = [16, 16], strides = [1, 1]} : vector<32x48xf32> to vector<16x16xf32>
    %24 = tpu.concatenate %18, %19, %20, %21, %22, %23 in 1 : vector<16x16xf32>, vector<16x16xf32>, vector<16x16xf32>, vector<16x16xf32>, vector<16x16xf32>, vector<16x16xf32> -> vector<16x96xf32>
    %25 = vector.extract_strided_slice %17 {offsets = [16, 0], sizes = [16, 16], strides = [1, 1]} : vector<32x48xf32> to vector<16x16xf32>
    %26 = vector.extract_strided_slice %17 {offsets = [16, 0], sizes = [16, 16], strides = [1, 1]} : vector<32x48xf32> to vector<16x16xf32>
    %27 = vector.extract_strided_slice %17 {offsets = [16, 16], sizes = [16, 16], strides = [1, 1]} : vector<32x48xf32> to vector<16x16xf32>
    %28 = vector.extract_strided_slice %17 {offsets = [16, 16], sizes = [16, 16], strides = [1, 1]} : vector<32x48xf32> to vector<16x16xf32>
    %29 = vector.extract_strided_slice %17 {offsets = [16, 32], sizes = [16, 16], strides = [1, 1]} : vector<32x48xf32> to vector<16x16xf32>
    %30 = vector.extract_strided_slice %17 {offsets = [16, 32], sizes = [16, 16], strides = [1, 1]} : vector<32x48xf32> to vector<16x16xf32>
    %31 = tpu.concatenate %25, %26, %27, %28, %29, %30 in 1 : vector<16x16xf32>, vector<16x16xf32>, vector<16x16xf32>, vector<16x16xf32>, vector<16x16xf32>, vector<16x16xf32> -> vector<16x96xf32>
    %c0_6 = arith.constant 0 : index
    %c0_7 = arith.constant 0 : index
    %32 = vector.load %arg3[%c0_6, %c0_7] : memref<16x96xf32, #tpu.memory_space<vmem>>, vector<16x96xf32>
    %c0_8 = arith.constant 0 : index
    %c0_9 = arith.constant 0 : index
    %33 = vector.load %arg4[%c0_8, %c0_9] : memref<16x96xf32, #tpu.memory_space<vmem>>, vector<16x96xf32>
    %34 = arith.mulf %32, %24 : vector<16x96xf32>
    %35 = arith.mulf %33, %31 : vector<16x96xf32>
    %36 = arith.subf %34, %35 : vector<16x96xf32>
    %37 = arith.mulf %32, %31 : vector<16x96xf32>
    %38 = arith.mulf %33, %24 : vector<16x96xf32>
    %39 = arith.addf %37, %38 : vector<16x96xf32>
    %40 = vector.extract_strided_slice %36 {offsets = [0, 0], sizes = [16, 16], strides = [1, 1]} : vector<16x96xf32> to vector<16x16xf32>
    %41 = vector.extract_strided_slice %39 {offsets = [0, 0], sizes = [16, 16], strides = [1, 1]} : vector<16x96xf32> to vector<16x16xf32>
    %42 = tpu.concatenate %40, %41 in 1 : vector<16x16xf32>, vector<16x16xf32> -> vector<16x32xf32>
    %43 = vector.extract_strided_slice %36 {offsets = [0, 16], sizes = [16, 16], strides = [1, 1]} : vector<16x96xf32> to vector<16x16xf32>
    %44 = vector.extract_strided_slice %39 {offsets = [0, 16], sizes = [16, 16], strides = [1, 1]} : vector<16x96xf32> to vector<16x16xf32>
    %45 = tpu.concatenate %43, %44 in 1 : vector<16x16xf32>, vector<16x16xf32> -> vector<16x32xf32>
    %46 = vector.extract_strided_slice %36 {offsets = [0, 32], sizes = [16, 16], strides = [1, 1]} : vector<16x96xf32> to vector<16x16xf32>
    %47 = vector.extract_strided_slice %39 {offsets = [0, 32], sizes = [16, 16], strides = [1, 1]} : vector<16x96xf32> to vector<16x16xf32>
    %48 = tpu.concatenate %46, %47 in 1 : vector<16x16xf32>, vector<16x16xf32> -> vector<16x32xf32>
    %49 = vector.extract_strided_slice %36 {offsets = [0, 48], sizes = [16, 16], strides = [1, 1]} : vector<16x96xf32> to vector<16x16xf32>
    %50 = vector.extract_strided_slice %39 {offsets = [0, 48], sizes = [16, 16], strides = [1, 1]} : vector<16x96xf32> to vector<16x16xf32>
    %51 = tpu.concatenate %49, %50 in 1 : vector<16x16xf32>, vector<16x16xf32> -> vector<16x32xf32>
    %52 = vector.extract_strided_slice %36 {offsets = [0, 64], sizes = [16, 16], strides = [1, 1]} : vector<16x96xf32> to vector<16x16xf32>
    %53 = vector.extract_strided_slice %39 {offsets = [0, 64], sizes = [16, 16], strides = [1, 1]} : vector<16x96xf32> to vector<16x16xf32>
    %54 = tpu.concatenate %52, %53 in 1 : vector<16x16xf32>, vector<16x16xf32> -> vector<16x32xf32>
    %55 = vector.extract_strided_slice %36 {offsets = [0, 80], sizes = [16, 16], strides = [1, 1]} : vector<16x96xf32> to vector<16x16xf32>
    %56 = vector.extract_strided_slice %39 {offsets = [0, 80], sizes = [16, 16], strides = [1, 1]} : vector<16x96xf32> to vector<16x16xf32>
    %57 = tpu.concatenate %55, %56 in 1 : vector<16x16xf32>, vector<16x16xf32> -> vector<16x32xf32>
    %58 = tpu.concatenate %42, %45, %48, %51, %54, %57 in 0 : vector<16x32xf32>, vector<16x32xf32>, vector<16x32xf32>, vector<16x32xf32>, vector<16x32xf32>, vector<16x32xf32> -> vector<96x32xf32>
    %cst_10 = arith.constant dense<0.000000e+00> : vector<96x32xf32>
    %59 = tpu.matmul %58, %1, %cst_10 {dimension_numbers = #tpu.dot_dimension_numbers<[1], [0], [0], [1], [0, 0, 1, 1], [], []>, precision = #tpu.contract_precision<fp32>} : vector<96x32xf32>, vector<32x32xf32>, vector<96x32xf32> -> vector<96x32xf32>
    %60 = vector.extract_strided_slice %59 {offsets = [0, 0], sizes = [16, 32], strides = [1, 1]} : vector<96x32xf32> to vector<16x32xf32>
    %61 = vector.extract_strided_slice %60 {offsets = [0, 0], sizes = [16, 16], strides = [1, 1]} : vector<16x32xf32> to vector<16x16xf32>
    %62 = vector.extract_strided_slice %60 {offsets = [0, 16], sizes = [16, 16], strides = [1, 1]} : vector<16x32xf32> to vector<16x16xf32>
    %63 = tpu.concatenate %61, %62 in 0 : vector<16x16xf32>, vector<16x16xf32> -> vector<32x16xf32>
    %64 = vector.extract_strided_slice %59 {offsets = [16, 0], sizes = [16, 32], strides = [1, 1]} : vector<96x32xf32> to vector<16x32xf32>
    %65 = vector.extract_strided_slice %64 {offsets = [0, 0], sizes = [16, 16], strides = [1, 1]} : vector<16x32xf32> to vector<16x16xf32>
    %66 = vector.extract_strided_slice %64 {offsets = [0, 16], sizes = [16, 16], strides = [1, 1]} : vector<16x32xf32> to vector<16x16xf32>
    %67 = tpu.concatenate %65, %66 in 0 : vector<16x16xf32>, vector<16x16xf32> -> vector<32x16xf32>
    %68 = vector.extract_strided_slice %59 {offsets = [32, 0], sizes = [16, 32], strides = [1, 1]} : vector<96x32xf32> to vector<16x32xf32>
    %69 = vector.extract_strided_slice %68 {offsets = [0, 0], sizes = [16, 16], strides = [1, 1]} : vector<16x32xf32> to vector<16x16xf32>
    %70 = vector.extract_strided_slice %68 {offsets = [0, 16], sizes = [16, 16], strides = [1, 1]} : vector<16x32xf32> to vector<16x16xf32>
    %71 = tpu.concatenate %69, %70 in 0 : vector<16x16xf32>, vector<16x16xf32> -> vector<32x16xf32>
    %72 = vector.extract_strided_slice %59 {offsets = [48, 0], sizes = [16, 32], strides = [1, 1]} : vector<96x32xf32> to vector<16x32xf32>
    %73 = vector.extract_strided_slice %72 {offsets = [0, 0], sizes = [16, 16], strides = [1, 1]} : vector<16x32xf32> to vector<16x16xf32>
    %74 = vector.extract_strided_slice %72 {offsets = [0, 16], sizes = [16, 16], strides = [1, 1]} : vector<16x32xf32> to vector<16x16xf32>
    %75 = tpu.concatenate %73, %74 in 0 : vector<16x16xf32>, vector<16x16xf32> -> vector<32x16xf32>
    %76 = vector.extract_strided_slice %59 {offsets = [64, 0], sizes = [16, 32], strides = [1, 1]} : vector<96x32xf32> to vector<16x32xf32>
    %77 = vector.extract_strided_slice %76 {offsets = [0, 0], sizes = [16, 16], strides = [1, 1]} : vector<16x32xf32> to vector<16x16xf32>
    %78 = vector.extract_strided_slice %76 {offsets = [0, 16], sizes = [16, 16], strides = [1, 1]} : vector<16x32xf32> to vector<16x16xf32>
    %79 = tpu.concatenate %77, %78 in 0 : vector<16x16xf32>, vector<16x16xf32> -> vector<32x16xf32>
    %80 = vector.extract_strided_slice %59 {offsets = [80, 0], sizes = [16, 32], strides = [1, 1]} : vector<96x32xf32> to vector<16x32xf32>
    %81 = vector.extract_strided_slice %80 {offsets = [0, 0], sizes = [16, 16], strides = [1, 1]} : vector<16x32xf32> to vector<16x16xf32>
    %82 = vector.extract_strided_slice %80 {offsets = [0, 16], sizes = [16, 16], strides = [1, 1]} : vector<16x32xf32> to vector<16x16xf32>
    %83 = tpu.concatenate %81, %82 in 0 : vector<16x16xf32>, vector<16x16xf32> -> vector<32x16xf32>
    %84 = tpu.concatenate %63, %67, %71, %75, %79, %83 in 1 : vector<32x16xf32>, vector<32x16xf32>, vector<32x16xf32>, vector<32x16xf32>, vector<32x16xf32>, vector<32x16xf32> -> vector<32x96xf32>
    %cst_11 = arith.constant dense<0.000000e+00> : vector<16x96xf32>
    %85 = tpu.matmul %0, %84, %cst_11 {dimension_numbers = #tpu.dot_dimension_numbers<[1], [0], [0], [1], [0, 0, 1, 1], [], []>, precision = #tpu.contract_precision<fp32>} : vector<16x32xf32>, vector<32x96xf32>, vector<16x96xf32> -> vector<16x96xf32>
    %c0_12 = arith.constant 0 : index
    %c0_13 = arith.constant 0 : index
    %86 = vector.load %arg5[%c0_12, %c0_13] : memref<1x96xf32, #tpu.memory_space<vmem>>, vector<1x96xf32>
    %87 = vector.broadcast %86 : vector<1x96xf32> to vector<16x96xf32>
    %88 = arith.subf %85, %87 : vector<16x96xf32>
    %c0_14 = arith.constant 0 : index
    %c0_15 = arith.constant 0 : index
    %89 = vector.load %arg6[%c0_14, %c0_15] : memref<1x96xf32, #tpu.memory_space<vmem>>, vector<1x96xf32>
    %90 = vector.broadcast %89 : vector<1x96xf32> to vector<16x96xf32>
    %91 = arith.mulf %88, %90 : vector<16x96xf32>
    %c0_16 = arith.constant 0 : index
    %c0_17 = arith.constant 0 : index
    %92 = vector.load %arg7[%c0_16, %c0_17] : memref<1x96xf32, #tpu.memory_space<vmem>>, vector<1x96xf32>
    %cst_18 = arith.constant -5.000000e-01 : f32
    %93 = vector.broadcast %cst_18 : f32 to vector<16x96xf32>
    %94 = arith.mulf %93, %91 : vector<16x96xf32>
    %95 = arith.mulf %94, %91 : vector<16x96xf32>
    %96 = math.exp %95 : vector<16x96xf32>
    %cst_19 = arith.constant 2.000000e+00 : f32
    %97 = vector.broadcast %cst_19 : f32 to vector<16x96xf32>
    %98 = arith.mulf %97, %96 : vector<16x96xf32>
    %cst_20 = arith.constant 1.000000e+00 : f32
    %99 = vector.broadcast %cst_20 : f32 to vector<16x96xf32>
    %100 = arith.subf %98, %99 : vector<16x96xf32>
    %101 = vector.broadcast %92 : vector<1x96xf32> to vector<16x96xf32>
    %102 = arith.mulf %101, %100 : vector<16x96xf32>
    %103 = vector.extract_strided_slice %2 {offsets = [0, 0], sizes = [16, 16], strides = [1, 1]} : vector<48x16xf32> to vector<16x16xf32>
    %104 = vector.extract_strided_slice %102 {offsets = [0, 0], sizes = [16, 16], strides = [1, 1]} : vector<16x96xf32> to vector<16x16xf32>
    %105 = arith.addf %103, %104 : vector<16x16xf32>
    %106 = vector.extract_strided_slice %102 {offsets = [0, 32], sizes = [16, 16], strides = [1, 1]} : vector<16x96xf32> to vector<16x16xf32>
    %107 = arith.addf %105, %106 : vector<16x16xf32>
    %cst_21 = arith.constant 5.000000e-01 : f32
    %108 = vector.broadcast %cst_21 : f32 to vector<16x16xf32>
    %109 = arith.subf %107, %108 : vector<16x16xf32>
    %cst_22 = arith.constant -4.000000e+00 : f32
    %110 = vector.broadcast %cst_22 : f32 to vector<16x16xf32>
    %111 = arith.mulf %110, %109 : vector<16x16xf32>
    %112 = math.exp %111 : vector<16x16xf32>
    %cst_23 = arith.constant 1.000000e+00 : f32
    %113 = vector.broadcast %cst_23 : f32 to vector<16x16xf32>
    %114 = arith.addf %113, %112 : vector<16x16xf32>
    %cst_24 = arith.constant 1.000000e+00 : f32
    %115 = vector.broadcast %cst_24 : f32 to vector<16x16xf32>
    %116 = arith.divf %115, %114 : vector<16x16xf32>
    %117 = vector.extract_strided_slice %2 {offsets = [16, 0], sizes = [16, 16], strides = [1, 1]} : vector<48x16xf32> to vector<16x16xf32>
    %118 = vector.extract_strided_slice %102 {offsets = [0, 16], sizes = [16, 16], strides = [1, 1]} : vector<16x96xf32> to vector<16x16xf32>
    %119 = arith.addf %117, %118 : vector<16x16xf32>
    %120 = vector.extract_strided_slice %102 {offsets = [0, 64], sizes = [16, 16], strides = [1, 1]} : vector<16x96xf32> to vector<16x16xf32>
    %121 = arith.addf %119, %120 : vector<16x16xf32>
    %cst_25 = arith.constant 5.000000e-01 : f32
    %122 = vector.broadcast %cst_25 : f32 to vector<16x16xf32>
    %123 = arith.subf %121, %122 : vector<16x16xf32>
    %cst_26 = arith.constant -4.000000e+00 : f32
    %124 = vector.broadcast %cst_26 : f32 to vector<16x16xf32>
    %125 = arith.mulf %124, %123 : vector<16x16xf32>
    %126 = math.exp %125 : vector<16x16xf32>
    %cst_27 = arith.constant 1.000000e+00 : f32
    %127 = vector.broadcast %cst_27 : f32 to vector<16x16xf32>
    %128 = arith.addf %127, %126 : vector<16x16xf32>
    %cst_28 = arith.constant 1.000000e+00 : f32
    %129 = vector.broadcast %cst_28 : f32 to vector<16x16xf32>
    %130 = arith.divf %129, %128 : vector<16x16xf32>
    %131 = vector.extract_strided_slice %2 {offsets = [32, 0], sizes = [16, 16], strides = [1, 1]} : vector<48x16xf32> to vector<16x16xf32>
    %132 = vector.extract_strided_slice %102 {offsets = [0, 48], sizes = [16, 16], strides = [1, 1]} : vector<16x96xf32> to vector<16x16xf32>
    %133 = arith.addf %131, %132 : vector<16x16xf32>
    %134 = vector.extract_strided_slice %102 {offsets = [0, 80], sizes = [16, 16], strides = [1, 1]} : vector<16x96xf32> to vector<16x16xf32>
    %135 = arith.addf %133, %134 : vector<16x16xf32>
    %cst_29 = arith.constant 5.000000e-01 : f32
    %136 = vector.broadcast %cst_29 : f32 to vector<16x16xf32>
    %137 = arith.subf %135, %136 : vector<16x16xf32>
    %cst_30 = arith.constant -4.000000e+00 : f32
    %138 = vector.broadcast %cst_30 : f32 to vector<16x16xf32>
    %139 = arith.mulf %138, %137 : vector<16x16xf32>
    %140 = math.exp %139 : vector<16x16xf32>
    %cst_31 = arith.constant 1.000000e+00 : f32
    %141 = vector.broadcast %cst_31 : f32 to vector<16x16xf32>
    %142 = arith.addf %141, %140 : vector<16x16xf32>
    %cst_32 = arith.constant 1.000000e+00 : f32
    %143 = vector.broadcast %cst_32 : f32 to vector<16x16xf32>
    %144 = arith.divf %143, %142 : vector<16x16xf32>
    %145 = tpu.concatenate %116, %130, %144 in 1 : vector<16x16xf32>, vector<16x16xf32>, vector<16x16xf32> -> vector<16x48xf32>
    %c0_33 = arith.constant 0 : index
    %c0_34 = arith.constant 0 : index
    %146 = vector.load %arg8[%c0_33, %c0_34] : memref<16x48xf32, #tpu.memory_space<vmem>>, vector<16x48xf32>
    tpu.vector_store %arg8[%c0_33, %c0_34], %145 {strides = array<i32>} : memref<16x48xf32, #tpu.memory_space<vmem>>, vector<16x48xf32>,
    return
  }
}

</mosaic_0001>

<bundles_post_ra>
// kernel: step.1
= control target key start
LH: loop header
LB: loop body
LE: loop exit
PB: predicated region body
PF: predicated region fallthrough
CT: control target
= control target key end

     0   :  { %13 = vsyncpa [#allocation3], 0  ;;  %s5075_s0 = inlined_call_operand.hbm [shape: f32[48,16], index: 0, kind: input, shape index: {}]   ;;  %s5076_s1 = inlined_call_operand.hbm [shape: f32[16,32], index: 1, kind: input, shape index: {}]   ;;  %s5077_s2 = inlined_call_operand.hbm [shape: f32[32,32], index: 2, kind: input, shape index: {}]   ;;  %s5078_s3 = inlined_call_operand.hbm [shape: f32[16,96], index: 3, kind: input, shape index: {}]   ;;  %s5079_s4 = inlined_call_operand.hbm [shape: f32[16,96], index: 4, kind: input, shape index: {}]   ;;  %s5080_s5 = inlined_call_operand.vmem [shape: f32[1,96], index: 5, kind: input, shape index: {}]   ;;  %s5081_s6 = inlined_call_operand.vmem [shape: f32[1,96], index: 6, kind: input, shape index: {}]   ;;  %s5082_s7 = inlined_call_operand.vmem [shape: f32[1,96], index: 7, kind: input, shape index: {}]   ;;  %s5083_s8 = inlined_call_operand.vmem [shape: f32[16,48], index: 8, kind: output, shape index: {}]  }
   0x1   :  { %14 = vsyncpa [#allocation5], 0 }
   0x2   :  { %15 = vsyncpa [#allocation8], 0  ;;  %s4215_s27 = smov [#allocation4]   ;;  %s4216_s29 = smov [#allocation7]  }
   0x3   :  { %s33_s28 = sshll.u32 %s4215_s27, 4  ;;  %s57_s30 = sshll.u32 %s4216_s29, 4  ;;  %s34_s28 = int_to_ptr.vmem [resolvable:$true] %s33_s28  ;;  %s58_s30 = int_to_ptr.vmem [resolvable:$true] %s57_s30 }
   0x4   :  { %s4117_s9 = scalar_lea.vmem %s34_s28, 256  ;;  %p4122_p1 = scmp.lt.s32.totalorder %s34_s28, %s34_s28 }
   0x5   :  { %p4118_p0 = scmp.ne.s32.totalorder %s34_s28, %s4117_s9  ;;  %p4123_p2 = scmp.lt.s32.totalorder %s4117_s9, %s4117_s9 }
   0x7   :  { %p4124_p3 = por %p4123_p2, %p4122_p1 }
   0x9   :  { %p4125_p4 = pnand %p4124_p3, %p4118_p0 }
   0xb   :  { %4128 = shalt.err (!%p4125_p4)
}
   0xc   :  { %s4217_s10 = smov 128   ;;  %s4218_s11 = smov 8  }
   0xd   :  { %39 = dma.hbm_to_vmem [thread:$0]  %s5076_s1, 256, %s34_s28, [#allocation5], %s4217_s10, %s4217_s10, %s4218_s11  }
   0xe   :  { %s4137_s14 = scalar_lea.vmem %s58_s30, 256  ;;  %p4142_p6 = scmp.lt.s32.totalorder %s58_s30, %s58_s30 }
   0xf   :  { %p4138_p5 = scmp.ne.s32.totalorder %s58_s30, %s4137_s14  ;;  %p4143_p7 = scmp.lt.s32.totalorder %s4137_s14, %s4137_s14 }
  0x11   :  { %p4144_p8 = por %p4143_p7, %p4142_p6 }
  0x13   :  { %p4145_p9 = pnand %p4144_p8, %p4138_p5 }
  0x15   :  { %4148 = shalt.err (!%p4145_p9)
}
  0x16   :  { %63 = dma.hbm_to_vmem [thread:$0]  %s5078_s3, 256, %s58_s30, [#allocation8], %s4217_s10, %s4217_s10, %s4218_s11  }
  0x17   :  { %s4219_s17 = smov [#allocation2]   ;;  %s4220_s19 = smov [#allocation6]  }
  0x18   :  { %s21_s18 = sshll.u32 %s4219_s17, 4  ;;  %s45_s20 = sshll.u32 %s4220_s19, 4  ;;  %s22_s18 = int_to_ptr.vmem [resolvable:$true] %s21_s18  ;;  %s46_s20 = int_to_ptr.vmem [resolvable:$true] %s45_s20 }
  0x19   :  { %s4157_s1 = scalar_lea.vmem %s22_s18, 768  ;;  %p4162_p11 = scmp.lt.s32.totalorder %s22_s18, %s22_s18 }
  0x1a   :  { %p4158_p10 = scmp.ne.s32.totalorder %s22_s18, %s4157_s1  ;;  %p4163_p12 = scmp.lt.s32.totalorder %s4157_s1, %s4157_s1 }
  0x1c   :  { %p4164_p13 = por %p4163_p12, %p4162_p11 }
  0x1e   :  { %p4165_p0 = pnand %p4164_p13, %p4158_p10 }
  0x20   :  { %4168 = shalt.err (!%p4165_p0)
}
  0x21   :  { %27 = dma.hbm_to_vmem [thread:$0]  %s5075_s0, 768, %s22_s18, [#allocation3], %s4217_s10, %s4217_s10, %s4218_s11  }
  0x22   :  { %s4177_s3 = scalar_lea.vmem %s46_s20, 512  ;;  %p4182_p2 = scmp.lt.s32.totalorder %s46_s20, %s46_s20 }
  0x23   :  { %p4178_p1 = scmp.ne.s32.totalorder %s46_s20, %s4177_s3  ;;  %p4183_p3 = scmp.lt.s32.totalorder %s4177_s3, %s4177_s3 }
  0x25   :  { %p4184_p4 = por %p4183_p3, %p4182_p2 }
  0x27   :  { %p4185_p5 = pnand %p4184_p4, %p4178_p1 }
  0x29   :  { %4188 = shalt.err (!%p4185_p5)
}
  0x2a   :  { %51 = dma.hbm_to_vmem [thread:$0]  %s5077_s2, 512, %s46_s20, [#allocation5], %s4217_s10, %s4217_s10, %s4218_s11  }
  0x2b   :  { %s4221_s25 = smov [#allocation9]  }
  0x2c   :  { %s69_s26 = sshll.u32 %s4221_s25, 4  ;;  %s70_s26 = int_to_ptr.vmem [resolvable:$true] %s69_s26 }
  0x2d   :  { %s4197_s27 = scalar_lea.vmem %s70_s26, 256  ;;  %p4202_p7 = scmp.lt.s32.totalorder %s70_s26, %s70_s26 }
  0x2e   :  { %p4198_p6 = scmp.ne.s32.totalorder %s70_s26, %s4197_s27  ;;  %p4203_p8 = scmp.lt.s32.totalorder %s4197_s27, %s4197_s27 }
  0x30   :  { %p4204_p9 = por %p4203_p8, %p4202_p7 }
  0x32   :  { %p4205_p10 = pnand %p4204_p9, %p4198_p6 }
  0x34   :  { %4208 = shalt.err (!%p4205_p10)
}
  0x35   :  { %75 = dma.hbm_to_vmem [thread:$0]  %s5079_s4, 256, %s70_s26, [#allocation8], %s4217_s10, %s4217_s10, %s4218_s11  }
  0x36   :  { %4209 = dma.done.wait [#allocation3], 768  }
  0x37   :  { %4210 = vsyncadd [#allocation3], 4294966528 }
  0x38   :  { %4211 = dma.done.wait [#allocation5], 768  }
  0x39   :  { %4212 = vsyncadd [#allocation5], 4294966528 }
  0x3a   :  { %4213 = dma.done.wait [#allocation8], 512  }
  0x3b   :  { %4214 = vsyncadd [#allocation8], 4294966784  ;;  %vm109_vm0 = vcmask 130048   ;;  %v98_v0 = vld [vmem:[#allocation4 + $0x8] sm:$0xff]  ;;  %v97_v1 = vld [vmem:[#allocation4] sm:$0xff]  ;;  %s4222_s2 = smov 112  }
  0x3c   :  { %v103_v2 = vld [vmem:[#allocation2] sm:$0xff]  ;;  %v4304_v3 = vand.u32 4294901760, %v98_v0  ;;  %v4306_v4 = vand.u32 4294901760, %v97_v1  ;;  %v104_v6 = vld [vmem:[#allocation2 + $0x8] sm:$0xff]  ;;  %v105_v7 = vld [vmem:[#allocation2 + $0x10] sm:$0xff]  ;;  %vm850_vm1 = vcmask 261120  }
  0x3d   :  { %v111_v5 = vsel %vm109_vm0, %v103_v2, 0  ;;  %v106_v8 = vld [vmem:[#allocation2 + $0x18] sm:$0xff]  ;;  %v114_v10 = vsel %vm109_vm0, %v104_v6, 0  ;;  %v117_v11 = vsel %vm109_vm0, %v105_v7, 0  ;;  %v107_v13 = vld [vmem:[#allocation2 + $0x20] sm:$0xff]  ;;  %v108_v14 = vld [vmem:[#allocation2 + $0x28] sm:$0xff] }
  0x3e   :  { %v4309_v9 = vand.u32 4294901760, %v111_v5  ;;  %v120_v12 = vsel %vm109_vm0, %v106_v8, 0  ;;  %3675 = vmatprep.subr.mxu0 %v4304_v3  ;;  %v285_v15 = vsub.f32 %v98_v0, %v4304_v3  ;;  %v4316_v16 = vand.u32 4294901760, %v114_v10  ;;  %s4223_s4 = smov 16   ;;  %s4224_s29 = smov 32  }
  0x3f   :  { %v292_v17 = vsub.f32 %v97_v1, %v4306_v4  ;;  %v4319_v18 = vand.u32 4294901760, %v117_v11  ;;  %3676 = vmatpush3.msra.mxu0 %v4304_v3  ;;  %v4326_v20 = vand.u32 4294901760, %v120_v12  ;;  %v123_v21 = vsel %vm109_vm0, %v107_v13, 0  ;;  %s4225_s30 = smov 48   ;;  %s4226_s9 = smov 96  }
  0x40   :  { %v4323_v19 = vsub.f32 %v111_v5, %v4309_v9  ;;  %3692 = vmatprep.mubr.f32.mxu1 %v4309_v9  ;;  %v126_v22 = vsel %vm109_vm0, %v108_v14, 0  ;;  %3677 = vmatprep.subr.mxu0 %v4306_v4  ;;  %v286_v23 = vand.u32 4294901760, %v285_v15  ;;  %v206_v24 = vsub.f32 %v114_v10, %v4316_v16  ;;  %s4227_s10 = smov 80   ;;  %s4228_s11 = smov 64  }
  0x41   :  { %v293_v25 = vand.u32 4294901760, %v292_v17  ;;  %v216_v26 = vsub.f32 %v117_v11, %v4319_v18  ;;  %3678 = vmatpush3.msra.mxu0 %v4306_v4  ;;  %v4336_v28 = vsub.f32 %v120_v12, %v4326_v20  ;;  %v4338_v29 = vand.u32 4294901760, %v123_v21 }
  0x42   :  { %v197_v27 = vand.u32 4294901760, %v4323_v19  ;;  %v4340_v30 = vand.u32 4294901760, %v126_v22  ;;  %v287_v31 = vsub.f32 %v285_v15, %v286_v23  ;;  %v207_v32 = vand.u32 4294901760, %v206_v24  ;;  %3701 = vmatprep.subr.mxu0 %v285_v15 }
  0x43   :  { %v294_v33 = vsub.f32 %v292_v17, %v293_v25  ;;  %v217_v34 = vand.u32 4294901760, %v216_v26  ;;  %v227_v36 = vand.u32 4294901760, %v4336_v28  ;;  %v236_v37 = vsub.f32 %v123_v21, %v4338_v29 }
  0x44   :  { %v198_v35 = vsub.f32 %v4323_v19, %v197_v27  ;;  %v246_v38 = vsub.f32 %v126_v22, %v4340_v30  ;;  %v288_v39 = vand.u32 4294901760, %v287_v31  ;;  %v208_v40 = vsub.f32 %v206_v24, %v207_v32 }
  0x45   :  { %v295_v41 = vand.u32 4294901760, %v294_v33  ;;  %v218_v42 = vsub.f32 %v216_v26, %v217_v34  ;;  %v228_v44 = vsub.f32 %v4336_v28, %v227_v36  ;;  %v237_v45 = vand.u32 4294901760, %v236_v37 }
  0x46   :  { %v199_v43 = vand.u32 4294901760, %v198_v35  ;;  %v247_v46 = vand.u32 4294901760, %v246_v38  ;;  %3688 = vmatprep.subr.mxu1 %v288_v39  ;;  %v209_v47 = vand.u32 4294901760, %v208_v40  ;;  %vm1505_vm2 = vcmask 392192  }
  0x47   :  { %v219_v48 = vand.u32 4294901760, %v218_v42  ;;  %3689 = vmatpush3.msra.mxu1 %v288_v39  ;;  %v238_v49 = vsub.f32 %v236_v37, %v237_v45  ;;  %v229_v50 = vand.u32 4294901760, %v228_v44  ;;  %vm1508_vm3 = vcmask 523264  }
  0x48   :  { %3679 = vmatprep.mubr.f32.mxu0 %v199_v43  ;;  %3690 = vmatprep.subr.mxu1 %v295_v41  ;;  %v248_v51 = vsub.f32 %v246_v38, %v247_v46  ;;  %vm1511_vm4 = vcmask 654336  }
  0x49   :  { %3680 = vmatmul.mubr.f32.vlgmr.msra.gmra.mxu0 %v209_v47  ;;  %3691 = vmatpush3.msra.mxu1 %v295_v41  ;;  %v239_v52 = vand.u32 4294901760, %v238_v49 }
  0x4a   :  { %3682 = vmatprep.mubr.f32.mxu0 %v219_v48  ;;  %3693 = vmatmul.mubr.f32.vlgmr.msra.gmra.mxu1 %v4316_v16  ;;  %v249_v53 = vand.u32 4294901760, %v248_v51 }
  0x4b   :  { %3702 = vmatpush3.msra.mxu0 %v285_v15  ;;  %3695 = vmatprep.mubr.f32.mxu1 %v4319_v18 }
  0x4c   :  { %3703 = vmatprep.subr.mxu0 %v292_v17  ;;  %3714 = vmatprep.subr.mxu1 %v4304_v3 }
  0x4d   :  { %3683 = vmatmul.mubr.f32.gmra.mxu0 %v229_v50  ;;  %3715 = vmatpush3.msra.mxu1 %v4304_v3 }
  0x4e   :  { %3685 = vmatprep.mubr.f32.mxu0 %v239_v52  ;;  %3704 = vmatpush3.msra.mxu0 %v292_v17 }
  0x4f   :  { %3696 = vmatmul.mubr.f32.gmra.mxu1 %v4326_v20  ;;  %3727 = vmatprep.subr.mxu0 %v286_v23 }
  0x50   :  { %3698 = vmatprep.mubr.f32.mxu1 %v4338_v29  ;;  %3716 = vmatprep.subr.mxu1 %v4306_v4 }
  0x51   :  { %3686 = vmatmul.mubr.f32.gmra.mxu0 %v249_v53  ;;  %3717 = vmatpush3.msra.mxu1 %v4306_v4 }
  0x52   :  { %3705 = vmatprep.mubr.f32.mxu0 %v4323_v19  ;;  %3740 = vmatprep.subr.mxu1 %v4304_v3 }
  0x53   :  { %3699 = vmatmul.mubr.f32.gmra.mxu1 %v4340_v30 }
  0x54   :  { %3718 = vmatprep.mubr.f32.mxu1 %v197_v27 }
  0x55   :  { %3706 = vmatmul.mubr.f32.vlgmr.msra.gmra.mxu0 %v206_v24 }
  0x56   :  { %3708 = vmatprep.mubr.f32.mxu0 %v216_v26  ;;  %3728 = vmatpush3.msra.mxu0 %v286_v23 }
  0x57   :  { %3719 = vmatmul.mubr.f32.vlgmr.msra.gmra.mxu1 %v207_v32  ;;  %3729 = vmatprep.subr.mxu0 %v293_v25 }
  0x58   :  { %3721 = vmatprep.mubr.f32.mxu1 %v217_v34  ;;  %3730 = vmatpush3.msra.mxu0 %v293_v25 }
  0x59   :  { %3709 = vmatmul.mubr.f32.gmra.mxu0 %v4336_v28  ;;  %3741 = vmatpush3.msra.mxu1 %v4304_v3 }
  0x5a   :  { %3711 = vmatprep.mubr.f32.mxu0 %v236_v37  ;;  %3742 = vmatprep.subr.mxu1 %v4306_v4 }
  0x5b   :  { %3722 = vmatmul.mubr.f32.gmra.mxu1 %v227_v36 }
  0x5c   :  { %3724 = vmatprep.mubr.f32.mxu1 %v237_v45  ;;  %3743 = vmatpush3.msra.mxu1 %v4306_v4 }
  0x5d   :  { %3712 = vmatmul.mubr.f32.gmra.mxu0 %v246_v38 }
  0x5e   :  { %3731 = vmatprep.mubr.f32.mxu0 %v4309_v9 }
  0x5f   :  { %3725 = vmatmul.mubr.f32.gmra.mxu1 %v247_v46 }
  0x60   :  { %3744 = vmatprep.mubr.f32.mxu1 %v4309_v9 }
  0x61   :  { %3732 = vmatmul.mubr.f32.vlgmr.msra.gmra.mxu0 %v4316_v16 }
  0x62   :  { %3734 = vmatprep.mubr.f32.mxu0 %v4319_v18 }
  0x63   :  { %3745 = vmatmul.mubr.f32.vlgmr.msra.gmra.mxu1 %v4316_v16 }
  0x64   :  { %3747 = vmatprep.mubr.f32.mxu1 %v4319_v18 }
  0x65   :  { %3735 = vmatmul.mubr.f32.gmra.mxu0 %v4326_v20 }
  0x66   :  { %3737 = vmatprep.mubr.f32.mxu0 %v4338_v29 }
  0x67   :  { %3748 = vmatmul.mubr.f32.gmra.mxu1 %v4326_v20 }
  0x68   :  { %3750 = vmatprep.mubr.f32.mxu1 %v4338_v29 }
  0x69   :  { %3738 = vmatmul.mubr.f32.gmra.mxu0 %v4340_v30 }
  0x6b   :  { %3751 = vmatmul.mubr.f32.gmra.mxu1 %v4340_v30 }
 0x109   :  { %v3681_v54 = vpop.f32.mrf.mxu0 }
 0x10a   :  { %v3694_v56 = vpop.f32.mrf.mxu1 }
 0x10b   :  { %v201_v55 = vpop.f32.mrf.mxu0  ;;  %v339_v22 = vadd.f32 %v3694_v56, %v3681_v54  ;;  %v4383_v56 = vld [vmem:[#allocation6] sm:$0xff] }
 0x10c   :  { %v332_v58 = vpop.f32.mrf.mxu1 }
 0x10d   :  { %v3684_v57 = vpop.f32.mrf.mxu0  ;;  %v333_v26 = vadd.f32 %v332_v58, %v201_v55 }
 0x10f   :  { %v221_v59 = vpop.f32.mrf.mxu0  ;;  %v3697_v60 = vpop.f32.mrf.mxu1 }
 0x110   :  { %v351_v11 = vadd.f32 %v3697_v60, %v3684_v57  ;;  %v856_v57 = vsel %vm850_vm1, %v4383_v56, 0 }
 0x111   :  { %v3687_v61 = vpop.f32.mrf.mxu0  ;;  %v344_v62 = vpop.f32.mrf.mxu1  ;;  %v4387_v58 = vand.u32 4294901760, %v856_v57 }
 0x112   :  { %v345_v14 = vadd.f32 %v344_v62, %v221_v59 }
 0x113   :  { %v241_v63 = vpop.f32.mrf.mxu0  ;;  %v3700_v0 = vpop.f32.mrf.mxu1  ;;  %v4390_v60 = vsub.f32 %v856_v57, %v4387_v58  ;;  %3775 = vmatprep.mubr.f32.mxu1 %v4387_v58 }
 0x114   :  { %v363_v18 = vadd.f32 %v3700_v0, %v3687_v61 }
 0x115   :  { %v356_v1 = vpop.f32.mrf.mxu1  ;;  %v3707_v2 = vpop.f32.mrf.mxu0  ;;  %v938_v62 = vand.u32 4294901760, %v4390_v60 }
 0x116   :  { %v357_v23 = vadd.f32 %v356_v1, %v241_v63  ;;  %v446_v29 = vadd.f32 %v3707_v2, %v339_v22 }
 0x117   :  { %v438_v3 = vpop.f32.mrf.mxu0  ;;  %v3720_v4 = vpop.f32.mrf.mxu1  ;;  %v939_v63 = vsub.f32 %v4390_v60, %v938_v62 }
 0x118   :  { %v439_v35 = vadd.f32 %v438_v3, %v333_v26  ;;  %v557_v41 = vadd.f32 %v3720_v4, %v446_v29  ;;  %v4405_v4 = vld [vmem:[#allocation6 + $0x8] sm:$0xff] }
 0x119   :  { %v3710_v5 = vpop.f32.mrf.mxu0  ;;  %v548_v6 = vpop.f32.mrf.mxu1  ;;  %v940_v1 = vand.u32 4294901760, %v939_v63 }
 0x11a   :  { %v460_v15 = vadd.f32 %v3710_v5, %v351_v11  ;;  %v549_v47 = vadd.f32 %v548_v6, %v439_v35  ;;  %v859_v6 = vsel %vm850_vm1, %v4405_v4, 0 }
 0x11b   :  { %v452_v7 = vpop.f32.mrf.mxu0  ;;  %v3723_v8 = vpop.f32.mrf.mxu1  ;;  %3761 = vmatprep.mubr.f32.mxu0 %v940_v1  ;;  %v4413_v11 = vand.u32 4294901760, %v859_v6 }
 0x11c   :  { %v453_v19 = vadd.f32 %v452_v7, %v345_v14  ;;  %v573_v24 = vadd.f32 %v3723_v8, %v460_v15  ;;  %v4409_v7 = vld [vmem:[#allocation6 + $0x10] sm:$0xff] }
 0x11d   :  { %v3713_v9 = vpop.f32.mrf.mxu0  ;;  %v564_v10 = vpop.f32.mrf.mxu1 }
 0x11e   :  { %v474_v25 = vadd.f32 %v3713_v9, %v363_v18  ;;  %v565_v30 = vadd.f32 %v564_v10, %v453_v19  ;;  %v4411_v9 = vld [vmem:[#allocation6 + $0x18] sm:$0xff]  ;;  %v4423_v18 = vsub.f32 %v859_v6, %v4413_v11 }
 0x11f   :  { %v466_v12 = vpop.f32.mrf.mxu0  ;;  %v3726_v13 = vpop.f32.mrf.mxu1 }
 0x120   :  { %v467_v31 = vadd.f32 %v466_v12, %v357_v23  ;;  %v589_v36 = vadd.f32 %v3726_v13, %v474_v25  ;;  %v862_v12 = vsel %vm850_vm1, %v4409_v7, 0  ;;  %v865_v13 = vsel %vm850_vm1, %v4411_v9, 0 }
 0x121   :  { %v580_v16 = vpop.f32.mrf.mxu1  ;;  %v3733_v17 = vpop.f32.mrf.mxu0  ;;  %v4419_v15 = vand.u32 4294901760, %v862_v12  ;;  %v4425_v19 = vand.u32 4294901760, %v865_v13  ;;  %v948_v29 = vand.u32 4294901760, %v4423_v18 }
 0x122   :  { %v581_v42 = vadd.f32 %v580_v16, %v467_v31  ;;  %v672_v48 = vadd.f32 %v3733_v17, %v557_v41 }
 0x123   :  { %v665_v20 = vpop.f32.mrf.mxu0  ;;  %v3746_v21 = vpop.f32.mrf.mxu1  ;;  %v4433_v25 = vsub.f32 %v862_v12, %v4419_v15 }
 0x124   :  { %v666_v52 = vadd.f32 %v665_v20, %v549_v47  ;;  %v775_v54 = vadd.f32 %v3746_v21, %v672_v48 }
 0x125   :  { %v3736_v27 = vpop.f32.mrf.mxu0  ;;  %v768_v28 = vpop.f32.mrf.mxu1 }
 0x126   :  { %v684_v32 = vadd.f32 %v3736_v27, %v573_v24  ;;  %v4378_v55 = vadd.f32 %v768_v28, %v666_v52 }
 0x127   :  { %v677_v33 = vpop.f32.mrf.mxu0  ;;  %v3749_v34 = vpop.f32.mrf.mxu1 }
 0x128   :  { %v678_v37 = vadd.f32 %v677_v33, %v565_v30  ;;  %v787_v38 = vadd.f32 %v3749_v34, %v684_v32  ;;  %v4441_v30 = vsub.f32 %v865_v13, %v4425_v19 }
 0x129   :  { %v3739_v39 = vpop.f32.mrf.mxu0  ;;  %v780_v40 = vpop.f32.mrf.mxu1 }
 0x12a   :  { %v696_v43 = vadd.f32 %v3739_v39, %v589_v36  ;;  %v781_v44 = vadd.f32 %v780_v40, %v678_v37  ;;  %814 = vrot.lane.b32.xlu0 %v787_v38, %s4222_s2  ;;  %v958_v36 = vand.u32 4294901760, %v4433_v25  ;;  %v949_v40 = vsub.f32 %v4423_v18, %v948_v29 }
 0x12b   :  { %v689_v45 = vpop.f32.mrf.mxu0  ;;  %v3752_v46 = vpop.f32.mrf.mxu1  ;;  %v968_v41 = vand.u32 4294901760, %v4441_v30 }
 0x12c   :  { %v690_v49 = vadd.f32 %v689_v45, %v581_v42  ;;  %v799_v50 = vadd.f32 %v3752_v46, %v696_v43  ;;  %812 = vrot.lane.b32.xlu1 %v781_v44, %s4222_s2  ;;  %v950_v52 = vand.u32 4294901760, %v949_v40 }
 0x12d   :  { %v792_v51 = vpop.f32.mrf.mxu1 }
 0x12e   :  { %v793_v53 = vadd.f32 %v792_v51, %v690_v49  ;;  %820 = vrot.lane.b32.xlu0 %v799_v50, %s4222_s2 }
 0x130   :  { %818 = vrot.lane.b32.xlu1 %v793_v53, %s4222_s2 }
 0x132   :  { %806 = vrot.lane.b32.xlu0 %v775_v54, %s4222_s2 }
 0x134   :  { %804 = vrot.lane.b32.xlu1 %v4378_v55, %s4222_s2 }
 0x19c   :  { %v815_v59 = vpop.permute.xlu0 %814 }
 0x19d   :  { %828 = vrot.lane.b32.xlu1 %v815_v59, %s4223_s4 }
 0x19e   :  { %v813_v61 = vpop.permute.xlu1 %812 }
 0x19f   :  { %826 = vrot.lane.b32.xlu0 %v813_v61, %s4223_s4 }
 0x1a0   :  { %v821_v0 = vpop.permute.xlu0 %820 }
 0x1a1   :  { %836 = vrot.lane.b32.xlu1 %v799_v50, %s4224_s29  ;;  %v959_v50 = vsub.f32 %v4433_v25, %v958_v36 }
 0x1a2   :  { %v819_v2 = vpop.permute.xlu1 %818 }
 0x1a3   :  { %840 = vrot.lane.b32.xlu0 %v821_v0, %s4224_s29  ;;  %v960_v59 = vand.u32 4294901760, %v959_v50 }
 0x1a4   :  { %v807_v5 = vpop.permute.xlu0 %806 }
 0x1a5   :  { %838 = vrot.lane.b32.xlu1 %v819_v2, %s4224_s29  ;;  %v4519_v2 = vand.u32 4294901760, %v4405_v4 }
 0x1a6   :  { %v805_v3 = vpop.permute.xlu1 %804 }
 0x1a7   :  { %824 = vrot.lane.b32.xlu0 %v787_v38, %s4223_s4 }
 0x1a9   :  { %834 = vrot.lane.b32.xlu1 %v793_v53, %s4224_s29  ;;  %v969_v53 = vsub.f32 %v4441_v30, %v968_v41 }
 0x1ab   :  { %822 = vrot.lane.b32.xlu0 %v781_v44, %s4223_s4  ;;  %v970_v63 = vand.u32 4294901760, %v969_v53 }
 0x20f   :  { %v829_v8 = vpop.permute.xlu1 %828 }
 0x210   :  { %v849_v16 = vsel %vm109_vm0, %v807_v5, %v829_v8 }
 0x211   :  { %v827_v10 = vpop.permute.xlu0 %826 }
 0x212   :  { %v848_v21 = vsel %vm109_vm0, %v805_v3, %v827_v10 }
 0x213   :  { %v837_v14 = vpop.permute.xlu1 %836 }
 0x215   :  { %v841_v17 = vpop.permute.xlu0 %840 }
 0x216   :  { %v854_v20 = vsel %vm850_vm1, %v849_v16, %v841_v17 }
 0x217   :  { %v4429_v22 = vand.u32 4294901760, %v854_v20  ;;  %v839_v23 = vpop.permute.xlu1 %838 }
 0x218   :  { %v853_v24 = vsel %vm850_vm1, %v848_v21, %v839_v23 }
 0x219   :  { %v1002_v26 = vsub.f32 %v854_v20, %v4429_v22  ;;  %v4436_v27 = vand.u32 4294901760, %v853_v24  ;;  %v825_v28 = vpop.permute.xlu0 %824  ;;  %3753 = vmatprep.subr.mxu0 %v4429_v22 }
 0x21a   :  { %v847_v31 = vsel %vm109_vm0, %v775_v54, %v825_v28  ;;  %3754 = vmatpush3.msra.mxu0 %v4429_v22 }
 0x21b   :  { %v1009_v32 = vsub.f32 %v853_v24, %v4436_v27  ;;  %v852_v33 = vsel %vm850_vm1, %v847_v31, %v837_v14  ;;  %3755 = vmatprep.subr.mxu0 %v4436_v27  ;;  %v1003_v34 = vand.u32 4294901760, %v1002_v26  ;;  %v835_v43 = vpop.permute.xlu1 %834 }
 0x21c   :  { %v4448_v35 = vand.u32 4294901760, %v852_v33  ;;  %3756 = vmatpush3.msra.mxu0 %v4436_v27 }
 0x21d   :  { %v823_v37 = vpop.permute.xlu0 %822  ;;  %v1004_v38 = vsub.f32 %v1002_v26, %v1003_v34  ;;  %v1010_v39 = vand.u32 4294901760, %v1009_v32 }
 0x21e   :  { %v1016_v42 = vsub.f32 %v852_v33, %v4448_v35  ;;  %v846_v44 = vsel %vm109_vm0, %v4378_v55, %v823_v37  ;;  %3757 = vmatprep.subr.mxu0 %v4448_v35 }
 0x21f   :  { %v851_v45 = vsel %vm850_vm1, %v846_v44, %v835_v43  ;;  %3758 = vmatpush3.msra.mxu0 %v4448_v35  ;;  %v1005_v46 = vand.u32 4294901760, %v1004_v38  ;;  %v1011_v47 = vsub.f32 %v1009_v32, %v1010_v39 }
 0x220   :  { %v4462_v48 = vand.u32 4294901760, %v851_v45  ;;  %v1017_v49 = vand.u32 4294901760, %v1016_v42 }
 0x221   :  { %3767 = vmatprep.subr.mxu1 %v1005_v46  ;;  %v1012_v51 = vand.u32 4294901760, %v1011_v47 }
 0x222   :  { %v1023_v54 = vsub.f32 %v851_v45, %v4462_v48  ;;  %3759 = vmatprep.subr.mxu0 %v4462_v48  ;;  %3768 = vmatpush3.msra.mxu1 %v1005_v46  ;;  %v1018_v55 = vsub.f32 %v1016_v42, %v1017_v49 }
 0x223   :  { %3760 = vmatpush3.msra.mxu0 %v4462_v48  ;;  %3769 = vmatprep.subr.mxu1 %v1012_v51 }
 0x224   :  { %3770 = vmatpush3.msra.mxu1 %v1012_v51  ;;  %3781 = vmatprep.subr.mxu0 %v1002_v26  ;;  %v1019_v57 = vand.u32 4294901760, %v1018_v55  ;;  %v1024_v61 = vand.u32 4294901760, %v1023_v54 }
 0x225   :  { %3762 = vmatmul.mubr.f32.vlgmr.msra.gmra.mxu0 %v950_v52 }
 0x226   :  { %3782 = vmatpush3.msra.mxu0 %v1002_v26  ;;  %3771 = vmatprep.subr.mxu1 %v1019_v57  ;;  %v1025_v0 = vsub.f32 %v1023_v54, %v1024_v61 }
 0x227   :  { %3783 = vmatprep.subr.mxu0 %v1009_v32  ;;  %3772 = vmatpush3.msra.mxu1 %v1019_v57 }
 0x228   :  { %3784 = vmatpush3.msra.mxu0 %v1009_v32  ;;  %3764 = vmatprep.mubr.f32.mxu0 %v960_v59  ;;  %v1026_v1 = vand.u32 4294901760, %v1025_v0 }
 0x229   :  { %3785 = vmatprep.subr.mxu0 %v1016_v42  ;;  %3765 = vmatmul.mubr.f32.gmra.mxu0 %v970_v63 }
 0x22a   :  { %3786 = vmatpush3.msra.mxu0 %v1016_v42  ;;  %3773 = vmatprep.subr.mxu1 %v1026_v1 }
 0x22b   :  { %3787 = vmatprep.subr.mxu0 %v1023_v54  ;;  %3774 = vmatpush3.msra.mxu1 %v1026_v1 }
 0x22c   :  { %3788 = vmatpush3.msra.mxu0 %v1023_v54  ;;  %3776 = vmatmul.mubr.f32.vlgmr.msra.gmra.mxu1 %v4413_v11 }
 0x22d   :  { %3789 = vmatprep.mubr.f32.mxu0 %v4390_v60  ;;  %3795 = vmatprep.subr.mxu1 %v4429_v22  ;;  %v4505_v60 = vand.u32 4294901760, %v4411_v9 }
 0x22e   :  { %3809 = vmatprep.subr.mxu0 %v1003_v34  ;;  %3790 = vmatmul.mubr.f32.vlgmr.msra.gmra.mxu0 %v4423_v18 }
 0x22f   :  { %3796 = vmatpush3.msra.mxu1 %v4429_v22  ;;  %3810 = vmatpush3.msra.mxu0 %v1003_v34 }
 0x230   :  { %3797 = vmatprep.subr.mxu1 %v4436_v27  ;;  %3811 = vmatprep.subr.mxu0 %v1010_v39 }
 0x231   :  { %3778 = vmatprep.mubr.f32.mxu1 %v4419_v15  ;;  %3798 = vmatpush3.msra.mxu1 %v4436_v27 }
 0x232   :  { %3812 = vmatpush3.msra.mxu0 %v1010_v39  ;;  %3779 = vmatmul.mubr.f32.gmra.mxu1 %v4425_v19 }
 0x233   :  { %3799 = vmatprep.subr.mxu1 %v4448_v35  ;;  %3813 = vmatprep.subr.mxu0 %v1017_v49 }
 0x234   :  { %3792 = vmatprep.mubr.f32.mxu0 %v4433_v25  ;;  %3800 = vmatpush3.msra.mxu1 %v4448_v35 }
 0x235   :  { %3814 = vmatpush3.msra.mxu0 %v1017_v49  ;;  %3801 = vmatprep.subr.mxu1 %v4462_v48 }
 0x236   :  { %3793 = vmatmul.mubr.f32.gmra.mxu0 %v4441_v30  ;;  %3815 = vmatprep.subr.mxu0 %v1024_v61 }
 0x237   :  { %3802 = vmatpush3.msra.mxu1 %v4462_v48  ;;  %3803 = vmatprep.mubr.f32.mxu1 %v938_v62  ;;  %v4512_v62 = vand.u32 4294901760, %v4409_v7 }
 0x238   :  { %3816 = vmatpush3.msra.mxu0 %v1024_v61  ;;  %3804 = vmatmul.mubr.f32.vlgmr.msra.gmra.mxu1 %v948_v29 }
 0x239   :  { %3823 = vmatprep.subr.mxu1 %v4429_v22  ;;  %3817 = vmatprep.mubr.f32.mxu0 %v4387_v58 }
 0x23a   :  { %3824 = vmatpush3.msra.mxu1 %v4429_v22  ;;  %3818 = vmatmul.mubr.f32.vlgmr.msra.gmra.mxu0 %v4413_v11 }
 0x23b   :  { %3825 = vmatprep.subr.mxu1 %v4436_v27  ;;  %3806 = vmatprep.mubr.f32.mxu1 %v958_v36 }
 0x23c   :  { %3826 = vmatpush3.msra.mxu1 %v4436_v27  ;;  %3820 = vmatprep.mubr.f32.mxu0 %v4419_v15 }
 0x23d   :  { %3807 = vmatmul.mubr.f32.gmra.mxu1 %v968_v41  ;;  %3827 = vmatprep.subr.mxu1 %v4448_v35 }
 0x23e   :  { %3828 = vmatpush3.msra.mxu1 %v4448_v35  ;;  %3821 = vmatmul.mubr.f32.gmra.mxu0 %v4425_v19 }
 0x23f   :  { %3829 = vmatprep.subr.mxu1 %v4462_v48  ;;  %3831 = vmatprep.mubr.f32.mxu1 %v4387_v58  ;;  %v4525_v58 = vand.u32 4294901760, %v4383_v56 }
 0x240   :  { %3830 = vmatpush3.msra.mxu1 %v4462_v48  ;;  %3837 = vmatprep.subr.mxu0 %v4505_v60 }
 0x241   :  { %3832 = vmatmul.mubr.f32.vlgmr.msra.gmra.mxu1 %v4413_v11  ;;  %3838 = vmatpush3.msra.mxu0 %v4505_v60 }
 0x242   :  { %3834 = vmatprep.mubr.f32.mxu1 %v4419_v15  ;;  %3839 = vmatprep.subr.mxu0 %v4512_v62 }
 0x243   :  { %3840 = vmatpush3.msra.mxu0 %v4512_v62 }
 0x244   :  { %3841 = vmatprep.subr.mxu0 %v4519_v2 }
 0x245   :  { %3835 = vmatmul.mubr.f32.gmra.mxu1 %v4425_v19  ;;  %3842 = vmatpush3.msra.mxu0 %v4519_v2 }
 0x246   :  { %3843 = vmatprep.subr.mxu0 %v4525_v58 }
 0x247   :  { %3844 = vmatpush3.msra.mxu0 %v4525_v58 }
 0x2e5   :  { %v3763_v3 = vpop.f32.mrf.mxu0 }
 0x2e7   :  { %v942_v5 = vpop.f32.mrf.mxu0 }
 0x2e9   :  { %v3766_v6 = vpop.f32.mrf.mxu0 }
 0x2eb   :  { %v962_v8 = vpop.f32.mrf.mxu0 }
 0x2ec   :  { %v3777_v10 = vpop.f32.mrf.mxu1 }
 0x2ed   :  { %v1070_v16 = vadd.f32 %v3777_v10, %v3763_v3 }
 0x2ee   :  { %v1063_v11 = vpop.f32.mrf.mxu1  ;;  %v3791_v12 = vpop.f32.mrf.mxu0 }
 0x2ef   :  { %v1169_v20 = vadd.f32 %v3791_v12, %v1070_v16  ;;  %v1064_v27 = vadd.f32 %v1063_v11, %v942_v5  ;;  %v4554_v5 = vsub.f32 %v4411_v9, %v4505_v60  ;;  %v1545_v9 = vld [vmem:[#allocation7 + $0x8] sm:$0xff]  ;;  %v1547_v16 = vld [vmem:[#allocation9 + $0x8] sm:$0xff] }
 0x2f0   :  { %v1161_v14 = vpop.f32.mrf.mxu0 }
 0x2f1   :  { %v1162_v34 = vadd.f32 %v1161_v14, %v1064_v27  ;;  %v4559_v12 = vand.u32 4294901760, %v4554_v5  ;;  %3889 = vmatprep.subr.mxu0 %v4554_v5 }
 0x2f2   :  { %v3780_v13 = vpop.f32.mrf.mxu1 }
 0x2f3   :  { %v1082_v21 = vadd.f32 %v3780_v13, %v3766_v6  ;;  %v4563_v13 = vsub.f32 %v4409_v7, %v4512_v62 }
 0x2f4   :  { %v1075_v15 = vpop.f32.mrf.mxu1 }
 0x2f5   :  { %v1076_v35 = vadd.f32 %v1075_v15, %v962_v8 }
 0x2f6   :  { %v3794_v17 = vpop.f32.mrf.mxu0 }
 0x2f7   :  { %v1183_v28 = vadd.f32 %v3794_v17, %v1082_v21  ;;  %v1889_v17 = vsub.f32 %v4554_v5, %v4559_v12 }
 0x2f8   :  { %v1175_v18 = vpop.f32.mrf.mxu0  ;;  %v3805_v19 = vpop.f32.mrf.mxu1 }
 0x2f9   :  { %v1268_v24 = vadd.f32 %v3805_v19, %v1169_v20  ;;  %v1176_v41 = vadd.f32 %v1175_v18, %v1076_v35  ;;  %v4571_v18 = vand.u32 4294901760, %v4563_v13  ;;  %v4575_v19 = vsub.f32 %v4405_v4, %v4519_v2 }
 0x2fa   :  { %v1259_v22 = vpop.f32.mrf.mxu1  ;;  %v3819_v23 = vpop.f32.mrf.mxu0 }
 0x2fb   :  { %v1373_v30 = vadd.f32 %v3819_v23, %v1268_v24  ;;  %v1260_v38 = vadd.f32 %v1259_v22, %v1162_v34  ;;  %v4581_v23 = vsub.f32 %v4383_v56, %v4525_v58  ;;  %v4587_v27 = vand.u32 4294901760, %v4575_v19 }
 0x2fc   :  { %v1366_v26 = vpop.f32.mrf.mxu0 }
 0x2fd   :  { %v3808_v25 = vpop.f32.mrf.mxu1  ;;  %v1367_v43 = vadd.f32 %v1366_v26, %v1260_v38  ;;  %v1896_v26 = vsub.f32 %v4563_v13, %v4571_v18 }
 0x2fe   :  { %v1284_v31 = vadd.f32 %v3808_v25, %v1183_v28  ;;  %v3822_v32 = vpop.f32.mrf.mxu0  ;;  %v1890_v25 = vand.u32 4294901760, %v1889_v17 }
 0x2ff   :  { %v1275_v29 = vpop.f32.mrf.mxu1  ;;  %v1897_v56 = vand.u32 4294901760, %v1896_v26 }
 0x300   :  { %v1385_v39 = vadd.f32 %v3822_v32, %v1284_v31  ;;  %v1276_v44 = vadd.f32 %v1275_v29, %v1176_v41  ;;  %v1378_v45 = vpop.f32.mrf.mxu0  ;;  %3863 = vmatprep.subr.mxu1 %v1890_v25  ;;  %v1903_v32 = vsub.f32 %v4575_v19, %v4587_v27 }
 0x301   :  { %v3833_v33 = vpop.f32.mrf.mxu1  ;;  %3864 = vmatpush3.msra.mxu1 %v1890_v25 }
 0x302   :  { %v1466_v36 = vadd.f32 %v3833_v33, %v1373_v30  ;;  %v1379_v48 = vadd.f32 %v1378_v45, %v1276_v44  ;;  %v4590_v30 = vand.u32 4294901760, %v4581_v23  ;;  %3865 = vmatprep.subr.mxu1 %v1897_v56  ;;  %v1904_v38 = vand.u32 4294901760, %v1903_v32  ;;  %v1544_v45 = vld [vmem:[#allocation7] sm:$0xff] }
 0x303   :  { %v1459_v37 = vpop.f32.mrf.mxu1  ;;  %3866 = vmatpush3.msra.mxu1 %v1897_v56 }
 0x304   :  { %1485 = vrot.lane.b32.xlu0 %v1466_v36, %s4223_s4  ;;  %v1460_v46 = vadd.f32 %v1459_v37, %v1367_v43  ;;  %3867 = vmatprep.subr.mxu1 %v1904_v38 }
 0x305   :  { %v3836_v40 = vpop.f32.mrf.mxu1  ;;  %3868 = vmatpush3.msra.mxu1 %v1904_v38 }
 0x306   :  { %v1478_v42 = vadd.f32 %v3836_v40, %v1385_v39 }
 0x307   :  { %v1471_v47 = vpop.f32.mrf.mxu1 }
 0x308   :  { %1491 = vrot.lane.b32.xlu0 %v1466_v36, %s4224_s29  ;;  %1518 = vrot.lane.b32.xlu1 %v1478_v42, %s4223_s4  ;;  %v1472_v49 = vadd.f32 %v1471_v47, %v1379_v48 }
 0x30c   :  { %1524 = vrot.lane.b32.xlu1 %v1478_v42, %s4224_s29  ;;  %1483 = vrot.lane.b32.xlu0 %v1460_v46, %s4223_s4 }
 0x310   :  { %1489 = vrot.lane.b32.xlu0 %v1460_v46, %s4224_s29  ;;  %1516 = vrot.lane.b32.xlu1 %v1472_v49, %s4223_s4 }
 0x314   :  { %1495 = vrot.lane.b32.xlu0 %v1460_v46, %s4225_s30  ;;  %1522 = vrot.lane.b32.xlu1 %v1472_v49, %s4224_s29 }
 0x318   :  { %1497 = vrot.lane.b32.xlu0 %v1466_v36, %s4225_s30  ;;  %1528 = vrot.lane.b32.xlu1 %v1472_v49, %s4225_s30 }
 0x31c   :  { %1530 = vrot.lane.b32.xlu1 %v1478_v42, %s4225_s30 }
 0x376   :  { %v1486_v50 = vpop.permute.xlu0 %1485 }
 0x377   :  { %v1502_v59 = vsel %vm109_vm0, %v1466_v36, %v1486_v50  ;;  %v1910_v36 = vsub.f32 %v4581_v23, %v4590_v30 }
 0x378   :  { %v1504_v61 = vsel %vm850_vm1, %v1502_v59, %v1486_v50 }
 0x379   :  { %v1911_v41 = vand.u32 4294901760, %v1910_v36 }
 0x37a   :  { %v1492_v51 = vpop.permute.xlu0 %1491  ;;  %v1519_v52 = vpop.permute.xlu1 %1518 }
 0x37b   :  { %v1507_v1 = vsel %vm1505_vm2, %v1504_v61, %v1492_v51  ;;  %v1535_v3 = vsel %vm109_vm0, %v1478_v42, %v1519_v52  ;;  %3869 = vmatprep.subr.mxu1 %v1911_v41 }
 0x37c   :  { %v1510_v6 = vsel %vm1508_vm3, %v1507_v1, %v1492_v51  ;;  %v1537_v8 = vsel %vm850_vm1, %v1535_v3, %v1519_v52  ;;  %3870 = vmatpush3.msra.mxu1 %v1911_v41 }
 0x37d   :  { %3915 = vmatprep.subr.mxu1 %v4505_v60 }
 0x37e   :  { %v1525_v53 = vpop.permute.xlu1 %1524  ;;  %v1484_v54 = vpop.permute.xlu0 %1483 }
 0x37f   :  { %v1539_v14 = vsel %vm1505_vm2, %v1537_v8, %v1525_v53  ;;  %v1501_v31 = vsel %vm109_vm0, %v1460_v46, %v1484_v54  ;;  %v1546_v46 = vld [vmem:[#allocation9] sm:$0xff] }
 0x380   :  { %v1541_v7 = vsel %vm1508_vm3, %v1539_v14, %v1525_v53  ;;  %v1503_v39 = vsel %vm850_vm1, %v1501_v31, %v1484_v54 }
 0x382   :  { %v4544_v55 = vpop.permute.xlu0 %1489  ;;  %v1517_v57 = vpop.permute.xlu1 %1516 }
 0x383   :  { %v1534_v20 = vsel %vm109_vm0, %v1472_v49, %v1517_v57  ;;  %v1506_v40 = vsel %vm1505_vm2, %v1503_v39, %v4544_v55 }
 0x384   :  { %v1536_v33 = vsel %vm850_vm1, %v1534_v20, %v1517_v57  ;;  %v1509_v44 = vsel %vm1508_vm3, %v1506_v40, %v4544_v55 }
 0x386   :  { %v4548_v63 = vpop.permute.xlu0 %1495  ;;  %v1523_v0 = vpop.permute.xlu1 %1522 }
 0x387   :  { %v1538_v37 = vsel %vm1505_vm2, %v1536_v33, %v1523_v0  ;;  %v1512_v47 = vsel %vm1511_vm4, %v1509_v44, %v4548_v63 }
 0x388   :  { %v1540_v42 = vsel %vm1508_vm3, %v1538_v37, %v1523_v0  ;;  %v1556_v49 = vmul.f32 %v1546_v46, %v1512_v47  ;;  %v1548_v52 = vmul.f32 %v1544_v45, %v1512_v47 }
 0x38a   :  { %v1498_v10 = vpop.permute.xlu0 %1497  ;;  %v1529_v11 = vpop.permute.xlu1 %1528 }
 0x38b   :  { %v1513_v15 = vsel %vm1511_vm4, %v1510_v6, %v1498_v10  ;;  %v1542_v43 = vsel %vm1511_vm4, %v1540_v42, %v1529_v11 }
 0x38c   :  { %v1549_v21 = vmul.f32 %v1545_v9, %v1513_v15  ;;  %v1557_v4 = vmul.f32 %v1547_v16, %v1513_v15  ;;  %v1554_v48 = vmul.f32 %v1544_v45, %v1542_v43  ;;  %v1550_v50 = vmul.f32 %v1546_v46, %v1542_v43 }
 0x38e   :  { %v1531_v22 = vpop.permute.xlu1 %1530  ;;  %v1558_v51 = vadd.f32 %v1556_v49, %v1554_v48  ;;  %v1552_v53 = vsub.f32 %v1548_v52, %v1550_v50 }
 0x38f   :  { %v1543_v24 = vsel %vm1511_vm4, %v1541_v7, %v1531_v22 }
 0x390   :  { %v1551_v28 = vmul.f32 %v1547_v16, %v1543_v24  ;;  %v1555_v29 = vmul.f32 %v1545_v9, %v1543_v24 }
 0x392   :  { %v1553_v34 = vsub.f32 %v1549_v21, %v1551_v28  ;;  %v1559_v35 = vadd.f32 %v1557_v4, %v1555_v29 }
 0x394   :  { %1564 = vrot.lane.b32.xlu1 %v1559_v35, %s4223_s4  ;;  %1582 = vrot.lane.b32.xlu0 %v1553_v34, %s4226_s9 }
 0x398   :  { %1596 = vrot.lane.b32.xlu0 %v1553_v34, %s4227_s10  ;;  %1574 = vrot.lane.b32.xlu1 %v1553_v34, %s4222_s2 }
 0x39c   :  { %1610 = vrot.lane.b32.xlu0 %v1553_v34, %s4228_s11  ;;  %1588 = vrot.lane.b32.xlu1 %v1559_v35, %s4222_s2 }
 0x3a0   :  { %1562 = vrot.lane.b32.xlu0 %v1558_v51, %s4223_s4  ;;  %1602 = vrot.lane.b32.xlu1 %v1559_v35, %s4226_s9 }
 0x3a4   :  { %1572 = vrot.lane.b32.xlu0 %v1552_v53, %s4222_s2  ;;  %1616 = vrot.lane.b32.xlu1 %v1559_v35, %s4227_s10 }
 0x3a8   :  { %1580 = vrot.lane.b32.xlu0 %v1552_v53, %s4226_s9  ;;  %1586 = vrot.lane.b32.xlu1 %v1558_v51, %s4222_s2 }
 0x3ac   :  { %1594 = vrot.lane.b32.xlu0 %v1552_v53, %s4227_s10  ;;  %1600 = vrot.lane.b32.xlu1 %v1558_v51, %s4226_s9 }
 0x3b0   :  { %1608 = vrot.lane.b32.xlu0 %v1552_v53, %s4228_s11  ;;  %1614 = vrot.lane.b32.xlu1 %v1558_v51, %s4227_s10 }
 0x3b4   :  { %1622 = vrot.lane.b32.xlu0 %v1552_v53, %s4225_s30  ;;  %1628 = vrot.lane.b32.xlu1 %v1558_v51, %s4228_s11 }
 0x3b8   :  { %1624 = vrot.lane.b32.xlu0 %v1553_v34, %s4225_s30  ;;  %1630 = vrot.lane.b32.xlu1 %v1559_v35, %s4228_s11 }
 0x406   :  { %v1565_v54 = vpop.permute.xlu1 %1564  ;;  %v1583_v55 = vpop.permute.xlu0 %1582 }
 0x407   :  { %v1569_v57 = vsel %vm109_vm0, %v1553_v34, %v1565_v54 }
 0x408   :  { %v1640_v59 = vsel %vm850_vm1, %v1569_v57, 0 }
 0x409   :  { %v4632_v1 = vand.u32 4294901760, %v1640_v59 }
 0x40a   :  { %v1597_v61 = vpop.permute.xlu0 %1596  ;;  %v1575_v63 = vpop.permute.xlu1 %1574 }
 0x40b   :  { %v1579_v0 = vsel %vm109_vm0, %v1575_v63, %v1559_v35  ;;  %v4637_v11 = vsub.f32 %v1640_v59, %v4632_v1 }
 0x40c   :  { %v1646_v8 = vsel %vm850_vm1, %v1579_v0, 0 }
 0x40d   :  { %v4639_v14 = vand.u32 4294901760, %v1646_v8  ;;  %v1753_v21 = vand.u32 4294901760, %v4637_v11 }
 0x40e   :  { %v1611_v3 = vpop.permute.xlu0 %1610  ;;  %v1589_v6 = vpop.permute.xlu1 %1588 }
 0x40f   :  { %v1593_v10 = vsel %vm109_vm0, %v1583_v55, %v1589_v6  ;;  %v4649_v24 = vsub.f32 %v1646_v8, %v4639_v14  ;;  %v1754_v33 = vsub.f32 %v4637_v11, %v1753_v21 }
 0x410   :  { %v1652_v16 = vsel %vm850_vm1, %v1593_v10, 0 }
 0x411   :  { %v4651_v25 = vand.u32 4294901760, %v1652_v16  ;;  %v1773_v40 = vand.u32 4294901760, %v4649_v24  ;;  %v1755_v46 = vand.u32 4294901760, %v1754_v33 }
 0x412   :  { %v1563_v9 = vpop.permute.xlu0 %1562  ;;  %v1603_v15 = vpop.permute.xlu1 %1602 }
 0x413   :  { %v1568_v17 = vsel %vm109_vm0, %v1552_v53, %v1563_v9  ;;  %v1607_v20 = vsel %vm109_vm0, %v1597_v61, %v1603_v15  ;;  %v4670_v36 = vsub.f32 %v1652_v16, %v4651_v25  ;;  %v1774_v54 = vsub.f32 %v4649_v24, %v1773_v40 }
 0x414   :  { %v1637_v7 = vsel %vm850_vm1, %v1568_v17, 0  ;;  %v1658_v29 = vsel %vm850_vm1, %v1607_v20, 0 }
 0x415   :  { %v4646_v22 = vand.u32 4294901760, %v1637_v7  ;;  %v4672_v37 = vand.u32 4294901760, %v1658_v29  ;;  %v1793_v55 = vand.u32 4294901760, %v4670_v36  ;;  %v1775_v15 = vand.u32 4294901760, %v1774_v54 }
 0x416   :  { %v1573_v26 = vpop.permute.xlu0 %1572  ;;  %v1617_v4 = vpop.permute.xlu1 %1616 }
 0x417   :  { %v4654_v28 = vsub.f32 %v1637_v7, %v4646_v22  ;;  %v1578_v31 = vsel %vm109_vm0, %v1573_v26, %v1558_v51  ;;  %3871 = vmatprep.mubr.f32.mxu1 %v4646_v22  ;;  %v1621_v32 = vsel %vm109_vm0, %v1611_v3, %v1617_v4  ;;  %v4692_v50 = vsub.f32 %v1658_v29, %v4672_v37 }
 0x418   :  { %v1643_v56 = vsel %vm850_vm1, %v1578_v31, 0  ;;  %3872 = vmatmul.mubr.f32.vlgmr.msra.gmra.mxu1 %v4632_v1  ;;  %v1664_v42 = vsel %vm850_vm1, %v1621_v32, 0  ;;  %v1794_v16 = vsub.f32 %v4670_v36, %v1793_v55 }
 0x419   :  { %v4665_v34 = vand.u32 4294901760, %v1643_v56  ;;  %v1743_v35 = vand.u32 4294901760, %v4654_v28  ;;  %3916 = vmatpush3.msra.mxu1 %v4505_v60  ;;  %v4694_v51 = vand.u32 4294901760, %v1664_v42  ;;  %v1813_v17 = vand.u32 4294901760, %v4692_v50 }
 0x41a   :  { %v1581_v38 = vpop.permute.xlu0 %1580  ;;  %v1587_v39 = vpop.permute.xlu1 %1586  ;;  %3917 = vmatprep.subr.mxu1 %v4512_v62  ;;  %v1795_v33 = vand.u32 4294901760, %v1794_v16 }
 0x41b   :  { %v4677_v41 = vsub.f32 %v1643_v56, %v4665_v34  ;;  %v1592_v43 = vsel %vm109_vm0, %v1581_v38, %v1587_v39  ;;  %3874 = vmatprep.mubr.f32.mxu1 %v4665_v34  ;;  %v1744_v44 = vsub.f32 %v4654_v28, %v1743_v35  ;;  %3918 = vmatpush3.msra.mxu1 %v4512_v62 }
 0x41c   :  { %v1649_v45 = vsel %vm850_vm1, %v1592_v43, 0  ;;  %3875 = vmatmul.mubr.f32.gmra.mxu1 %v4639_v14  ;;  %3919 = vmatprep.subr.mxu1 %v4519_v2  ;;  %v4717_v8 = vsub.f32 %v1664_v42, %v4694_v51  ;;  %v1814_v38 = vsub.f32 %v4692_v50, %v1813_v17 }
 0x41d   :  { %v4687_v47 = vand.u32 4294901760, %v1649_v45  ;;  %v1745_v48 = vand.u32 4294901760, %v1744_v44  ;;  %v1763_v49 = vand.u32 4294901760, %v4677_v41  ;;  %3920 = vmatpush3.msra.mxu1 %v4519_v2 }
 0x41e   :  { %v1595_v52 = vpop.permute.xlu0 %1594  ;;  %v1601_v53 = vpop.permute.xlu1 %1600  ;;  %3921 = vmatprep.subr.mxu1 %v4525_v58  ;;  %v1833_v39 = vand.u32 4294901760, %v4717_v8  ;;  %v1815_v54 = vand.u32 4294901760, %v1814_v38 }
 0x41f   :  { %v4702_v57 = vsub.f32 %v1649_v45, %v4687_v47  ;;  %v1606_v59 = vsel %vm109_vm0, %v1595_v52, %v1601_v53  ;;  %3845 = vmatprep.mubr.f32.mxu0 %v1745_v48  ;;  %3877 = vmatprep.mubr.f32.mxu1 %v4687_v47  ;;  %v1764_v61 = vsub.f32 %v4677_v41, %v1763_v49 }
 0x420   :  { %v1655_v63 = vsel %vm850_vm1, %v1606_v59, 0  ;;  %3846 = vmatmul.mubr.f32.vlgmr.msra.gmra.mxu0 %v1755_v46  ;;  %3878 = vmatmul.mubr.f32.gmra.mxu1 %v4651_v25  ;;  %v1834_v59 = vsub.f32 %v4717_v8, %v1833_v39 }
 0x421   :  { %v4711_v0 = vand.u32 4294901760, %v1655_v63  ;;  %v1765_v3 = vand.u32 4294901760, %v1764_v61  ;;  %v1783_v6 = vand.u32 4294901760, %v4702_v57  ;;  %3890 = vmatpush3.msra.mxu0 %v4554_v5  ;;  %3922 = vmatpush3.msra.mxu1 %v4525_v58 }
 0x422   :  { %v1609_v10 = vpop.permute.xlu0 %1608  ;;  %v1615_v9 = vpop.permute.xlu1 %1614  ;;  %3891 = vmatprep.subr.mxu0 %v4563_v13  ;;  %3967 = vmatprep.subr.mxu1 %v4505_v60  ;;  %v1835_v16 = vand.u32 4294901760, %v1834_v59 }
 0x423   :  { %v4726_v5 = vsub.f32 %v1655_v63, %v4711_v0  ;;  %v1620_v7 = vsel %vm109_vm0, %v1609_v10, %v1615_v9  ;;  %3848 = vmatprep.mubr.f32.mxu0 %v1765_v3  ;;  %3880 = vmatprep.mubr.f32.mxu1 %v4711_v0  ;;  %v1784_v20 = vsub.f32 %v4702_v57, %v1783_v6 }
 0x424   :  { %v1661_v26 = vsel %vm850_vm1, %v1620_v7, 0  ;;  %3849 = vmatmul.mubr.f32.gmra.mxu0 %v1775_v15  ;;  %3881 = vmatmul.mubr.f32.gmra.mxu1 %v4672_v37 }
 0x425   :  { %v4735_v4 = vand.u32 4294901760, %v1661_v26  ;;  %v1785_v29 = vand.u32 4294901760, %v1784_v20  ;;  %v1803_v31 = vand.u32 4294901760, %v4726_v5  ;;  %3892 = vmatpush3.msra.mxu0 %v4563_v13 }
 0x426   :  { %v1623_v56 = vpop.permute.xlu0 %1622  ;;  %v1629_v32 = vpop.permute.xlu1 %1628  ;;  %3893 = vmatprep.subr.mxu0 %v4575_v19 }
 0x427   :  { %v4747_v42 = vsub.f32 %v1661_v26, %v4735_v4  ;;  %v1634_v43 = vsel %vm109_vm0, %v1623_v56, %v1629_v32  ;;  %3851 = vmatprep.mubr.f32.mxu0 %v1785_v29  ;;  %3883 = vmatprep.mubr.f32.mxu1 %v4735_v4  ;;  %v1804_v13 = vsub.f32 %v4726_v5, %v1803_v31 }
 0x428   :  { %v1667_v44 = vsel %vm850_vm1, %v1634_v43, 0  ;;  %3852 = vmatmul.mubr.f32.gmra.mxu0 %v1795_v33  ;;  %3884 = vmatmul.mubr.f32.gmra.mxu1 %v4694_v51 }
 0x429   :  { %v4756_v45 = vand.u32 4294901760, %v1667_v44  ;;  %v1805_v46 = vand.u32 4294901760, %v1804_v13  ;;  %v1823_v48 = vand.u32 4294901760, %v4747_v42  ;;  %3894 = vmatpush3.msra.mxu0 %v4575_v19 }
 0x42a   :  { %v1625_v52 = vpop.permute.xlu0 %1624  ;;  %v1631_v53 = vpop.permute.xlu1 %1630  ;;  %3895 = vmatprep.subr.mxu0 %v4581_v23 }
 0x42b   :  { %v1842_v61 = vsub.f32 %v1667_v44, %v4756_v45  ;;  %v1635_v63 = vsel %vm109_vm0, %v1625_v52, %v1631_v53  ;;  %3854 = vmatprep.mubr.f32.mxu0 %v1805_v46  ;;  %3886 = vmatprep.mubr.f32.mxu1 %v4756_v45  ;;  %v1824_v3 = vsub.f32 %v4747_v42, %v1823_v48 }
 0x42c   :  { %v1670_v19 = vsel %vm850_vm1, %v1635_v63, 0  ;;  %3855 = vmatmul.mubr.f32.gmra.mxu0 %v1815_v54 }
 0x42d   :  { %v4769_v10 = vand.u32 4294901760, %v1670_v19  ;;  %v1825_v9 = vand.u32 4294901760, %v1824_v3  ;;  %v1843_v15 = vand.u32 4294901760, %v1842_v61  ;;  %3896 = vmatpush3.msra.mxu0 %v4581_v23 }
 0x42e   :  { %3941 = vmatprep.subr.mxu0 %v4559_v12 }
 0x42f   :  { %v1852_v7 = vsub.f32 %v1670_v19, %v4769_v10  ;;  %3857 = vmatprep.mubr.f32.mxu0 %v1825_v9  ;;  %3887 = vmatmul.mubr.f32.gmra.mxu1 %v4769_v10  ;;  %v1844_v20 = vsub.f32 %v1842_v61, %v1843_v15 }
 0x430   :  { %3858 = vmatmul.mubr.f32.gmra.mxu0 %v1835_v16  ;;  %3923 = vmatprep.mubr.f32.mxu1 %v1743_v35 }
 0x431   :  { %v1845_v26 = vand.u32 4294901760, %v1844_v20  ;;  %v1853_v29 = vand.u32 4294901760, %v1852_v7 }
 0x433   :  { %3860 = vmatprep.mubr.f32.mxu0 %v1845_v26  ;;  %3924 = vmatmul.mubr.f32.vlgmr.msra.gmra.mxu1 %v1753_v21  ;;  %v1854_v23 = vsub.f32 %v1852_v7, %v1853_v29 }
 0x434   :  { %3926 = vmatprep.mubr.f32.mxu1 %v1763_v49  ;;  %3968 = vmatpush3.msra.mxu1 %v4505_v60 }
 0x435   :  { %v1855_v56 = vand.u32 4294901760, %v1854_v23  ;;  %3969 = vmatprep.subr.mxu1 %v4512_v62 }
 0x436   :  { %3970 = vmatpush3.msra.mxu1 %v4512_v62 }
 0x437   :  { %3861 = vmatmul.mubr.f32.gmra.mxu0 %v1855_v56  ;;  %3927 = vmatmul.mubr.f32.gmra.mxu1 %v1773_v40 }
 0x438   :  { %3897 = vmatprep.mubr.f32.mxu0 %v4654_v28  ;;  %3929 = vmatprep.mubr.f32.mxu1 %v1783_v6 }
 0x439   :  { %3971 = vmatprep.subr.mxu1 %v4519_v2 }
 0x43a   :  { %3972 = vmatpush3.msra.mxu1 %v4519_v2 }
 0x43b   :  { %3898 = vmatmul.mubr.f32.vlgmr.msra.gmra.mxu0 %v4637_v11  ;;  %3930 = vmatmul.mubr.f32.gmra.mxu1 %v1793_v55 }
 0x43c   :  { %3900 = vmatprep.mubr.f32.mxu0 %v4677_v41  ;;  %3932 = vmatprep.mubr.f32.mxu1 %v1803_v31 }
 0x43d   :  { %3942 = vmatpush3.msra.mxu0 %v4559_v12  ;;  %3973 = vmatprep.subr.mxu1 %v4525_v58 }
 0x43e   :  { %3974 = vmatpush3.msra.mxu1 %v4525_v58  ;;  %3943 = vmatprep.subr.mxu0 %v4571_v18 }
 0x43f   :  { %3901 = vmatmul.mubr.f32.gmra.mxu0 %v4649_v24  ;;  %3933 = vmatmul.mubr.f32.gmra.mxu1 %v1813_v17 }
 0x440   :  { %3903 = vmatprep.mubr.f32.mxu0 %v4702_v57  ;;  %3935 = vmatprep.mubr.f32.mxu1 %v1823_v48 }
 0x441   :  { %3944 = vmatpush3.msra.mxu0 %v4571_v18 }
 0x442   :  { %3945 = vmatprep.subr.mxu0 %v4587_v27 }
 0x443   :  { %3904 = vmatmul.mubr.f32.gmra.mxu0 %v4670_v36  ;;  %3936 = vmatmul.mubr.f32.gmra.mxu1 %v1833_v39 }
 0x444   :  { %3906 = vmatprep.mubr.f32.mxu0 %v4726_v5  ;;  %3938 = vmatprep.mubr.f32.mxu1 %v1843_v15 }
 0x445   :  { %3946 = vmatpush3.msra.mxu0 %v4587_v27 }
 0x446   :  { %3947 = vmatprep.subr.mxu0 %v4590_v30 }
 0x447   :  { %3907 = vmatmul.mubr.f32.gmra.mxu0 %v4692_v50  ;;  %3939 = vmatmul.mubr.f32.gmra.mxu1 %v1853_v29 }
 0x448   :  { %3909 = vmatprep.mubr.f32.mxu0 %v4747_v42  ;;  %3975 = vmatprep.mubr.f32.mxu1 %v4646_v22 }
 0x449   :  { %3948 = vmatpush3.msra.mxu0 %v4590_v30 }
 0x44b   :  { %3910 = vmatmul.mubr.f32.gmra.mxu0 %v4717_v8  ;;  %3976 = vmatmul.mubr.f32.vlgmr.msra.gmra.mxu1 %v4632_v1 }
 0x44c   :  { %3912 = vmatprep.mubr.f32.mxu0 %v1842_v61  ;;  %3978 = vmatprep.mubr.f32.mxu1 %v4665_v34 }
 0x44f   :  { %3913 = vmatmul.mubr.f32.gmra.mxu0 %v1852_v7  ;;  %3979 = vmatmul.mubr.f32.gmra.mxu1 %v4639_v14 }
 0x450   :  { %3949 = vmatprep.mubr.f32.mxu0 %v4646_v22  ;;  %3981 = vmatprep.mubr.f32.mxu1 %v4687_v47 }
 0x453   :  { %3950 = vmatmul.mubr.f32.vlgmr.msra.gmra.mxu0 %v4632_v1  ;;  %3982 = vmatmul.mubr.f32.gmra.mxu1 %v4651_v25 }
 0x454   :  { %3952 = vmatprep.mubr.f32.mxu0 %v4665_v34  ;;  %3984 = vmatprep.mubr.f32.mxu1 %v4711_v0 }
 0x457   :  { %3953 = vmatmul.mubr.f32.gmra.mxu0 %v4639_v14  ;;  %3985 = vmatmul.mubr.f32.gmra.mxu1 %v4672_v37 }
 0x458   :  { %3955 = vmatprep.mubr.f32.mxu0 %v4687_v47  ;;  %3987 = vmatprep.mubr.f32.mxu1 %v4735_v4 }
 0x45b   :  { %3956 = vmatmul.mubr.f32.gmra.mxu0 %v4651_v25  ;;  %3988 = vmatmul.mubr.f32.gmra.mxu1 %v4694_v51 }
 0x45c   :  { %3958 = vmatprep.mubr.f32.mxu0 %v4711_v0  ;;  %3990 = vmatprep.mubr.f32.mxu1 %v4756_v45 }
 0x45f   :  { %3959 = vmatmul.mubr.f32.gmra.mxu0 %v4672_v37  ;;  %3991 = vmatmul.mubr.f32.gmra.mxu1 %v4769_v10 }
 0x460   :  { %3961 = vmatprep.mubr.f32.mxu0 %v4735_v4 }
 0x463   :  { %3962 = vmatmul.mubr.f32.gmra.mxu0 %v4694_v51 }
 0x464   :  { %3964 = vmatprep.mubr.f32.mxu0 %v4756_v45 }
 0x467   :  { %3965 = vmatmul.mubr.f32.gmra.mxu0 %v4769_v10 }
 0x4d8   :  { %v3873_v60 = vpop.f32.mrf.mxu1 }
 0x4da   :  { %v1948_v62 = vpop.f32.mrf.mxu1 }
 0x4dc   :  { %v3876_v2 = vpop.f32.mrf.mxu1 }
 0x4de   :  { %v1960_v58 = vpop.f32.mrf.mxu1 }
 0x4e0   :  { %v3847_v12 = vpop.f32.mrf.mxu0  ;;  %v3879_v18 = vpop.f32.mrf.mxu1 }
 0x4e1   :  { %v4841_v27 = vadd.f32 %v3873_v60, %v3847_v12 }
 0x4e2   :  { %v1747_v30 = vpop.f32.mrf.mxu0  ;;  %v1972_v1 = vpop.f32.mrf.mxu1 }
 0x4e3   :  { %v4843_v11 = vadd.f32 %v1948_v62, %v1747_v30 }
 0x4e4   :  { %v3850_v14 = vpop.f32.mrf.mxu0  ;;  %v3882_v21 = vpop.f32.mrf.mxu1 }
 0x4e5   :  { %v1967_v3 = vadd.f32 %v3876_v2, %v3850_v14 }
 0x4e6   :  { %v1767_v22 = vpop.f32.mrf.mxu0  ;;  %v1984_v24 = vpop.f32.mrf.mxu1 }
 0x4e7   :  { %v1961_v9 = vadd.f32 %v1960_v58, %v1767_v22 }
 0x4e8   :  { %v3853_v25 = vpop.f32.mrf.mxu0  ;;  %v4845_v28 = vpop.f32.mrf.mxu1 }
 0x4e9   :  { %v1979_v20 = vadd.f32 %v3879_v18, %v3853_v25 }
 0x4ea   :  { %v1787_v34 = vpop.f32.mrf.mxu0  ;;  %v4847_v36 = vpop.f32.mrf.mxu1 }
 0x4eb   :  { %v1973_v56 = vadd.f32 %v1972_v1, %v1787_v34 }
 0x4ec   :  { %v3856_v35 = vpop.f32.mrf.mxu0 }
 0x4ed   :  { %v1991_v30 = vadd.f32 %v3882_v21, %v3856_v35 }
 0x4ee   :  { %v1807_v37 = vpop.f32.mrf.mxu0 }
 0x4ef   :  { %v4849_v40 = vpop.f32.mrf.mxu1  ;;  %v1985_v14 = vadd.f32 %v1984_v24, %v1807_v37 }
 0x4f0   :  { %v3859_v41 = vpop.f32.mrf.mxu0 }
 0x4f1   :  { %v4851_v47 = vpop.f32.mrf.mxu1  ;;  %v2003_v25 = vadd.f32 %v4845_v28, %v3859_v41 }
 0x4f2   :  { %v1827_v50 = vpop.f32.mrf.mxu0 }
 0x4f3   :  { %v4853_v49 = vpop.f32.mrf.mxu1  ;;  %v1997_v34 = vadd.f32 %v4847_v36, %v1827_v50 }
 0x4f5   :  { %v4855_v51 = vpop.f32.mrf.mxu1 }
 0x4f6   :  { %5084 = vst [vmem:[#allocation13_spill] sm:$0xff] %v4855_v51 }
 0x4f7   :  { %v4857_v55 = vpop.f32.mrf.mxu0  ;;  %v3928_v57 = vpop.f32.mrf.mxu1 }
 0x4f9   :  { %v4859_v0 = vpop.f32.mrf.mxu0  ;;  %v2264_v6 = vpop.f32.mrf.mxu1 }
 0x4fa   :  { %v2009_v36 = vadd.f32 %v4851_v47, %v4859_v0 }
 0x4fb   :  { %v4861_v8 = vpop.f32.mrf.mxu0  ;;  %v3931_v17 = vpop.f32.mrf.mxu1 }
 0x4fd   :  { %v4863_v5 = vpop.f32.mrf.mxu0  ;;  %v2280_v4 = vpop.f32.mrf.mxu1 }
 0x4ff   :  { %v3902_v31 = vpop.f32.mrf.mxu0  ;;  %v3934_v32 = vpop.f32.mrf.mxu1 }
 0x500   :  { %v2116_v15 = vadd.f32 %v3902_v31, %v1967_v3 }
 0x501   :  { %v2108_v33 = vpop.f32.mrf.mxu0  ;;  %v2296_v38 = vpop.f32.mrf.mxu1 }
 0x502   :  { %v2109_v26 = vadd.f32 %v2108_v33, %v1961_v9  ;;  %v2273_v62 = vadd.f32 %v3928_v57, %v2116_v15 }
 0x503   :  { %v3905_v39 = vpop.f32.mrf.mxu0  ;;  %v4865_v42 = vpop.f32.mrf.mxu1 }
 0x504   :  { %v2130_v60 = vadd.f32 %v3905_v39, %v1979_v20  ;;  %v2265_v2 = vadd.f32 %v2264_v6, %v2109_v26 }
 0x505   :  { %v2122_v43 = vpop.f32.mrf.mxu0  ;;  %v4867_v13 = vpop.f32.mrf.mxu1 }
 0x506   :  { %v2289_v18 = vadd.f32 %v3931_v17, %v2130_v60  ;;  %v2015_v17 = vadd.f32 %v4849_v40, %v4857_v55  ;;  %v2102_v40 = vadd.f32 %v4861_v8, %v4841_v27 }
 0x507   :  { %v3908_v44 = vpop.f32.mrf.mxu0  ;;  %v4869_v45 = vpop.f32.mrf.mxu1 }
 0x508   :  { %v2144_v22 = vadd.f32 %v3908_v44, %v1991_v30  ;;  %v2257_v8 = vadd.f32 %v4853_v49, %v2102_v40 }
 0x509   :  { %v2136_v46 = vpop.f32.mrf.mxu0  ;;  %v4871_v48 = vpop.f32.mrf.mxu1 }
 0x50a   :  { %v2137_v9 = vadd.f32 %v2136_v46, %v1985_v14 }
 0x50b   :  { %v3911_v52 = vpop.f32.mrf.mxu0  ;;  %v4873_v53 = vpop.f32.mrf.mxu1 }
 0x50c   :  { %5085 = vst [vmem:[#allocation14_spill] sm:$0xff] %v4873_v53  ;;  %v2158_v35 = vadd.f32 %v3911_v52, %v2003_v25  ;;  %v4101_v25 = vld [vmem:[#allocation4] sm:$0xff] }
 0x50d   :  { %v2150_v54 = vpop.f32.mrf.mxu0  ;;  %v4875_v59 = vpop.f32.mrf.mxu1 }
 0x50e   :  { %5086 = vst [vmem:[#allocation15_spill] sm:$0xff] %v4875_v59  ;;  %v2123_v59 = vadd.f32 %v2122_v43, %v1973_v56  ;;  %v2305_v43 = vadd.f32 %v3934_v32, %v2144_v22  ;;  %v2151_v41 = vadd.f32 %v2150_v54, %v1997_v34  ;;  %v2321_v52 = vadd.f32 %v4865_v42, %v2158_v35 }
 0x50f   :  { %v3914_v61 = vpop.f32.mrf.mxu0  ;;  %v3980_v63 = vpop.f32.mrf.mxu1 }
 0x510   :  { %v2281_v21 = vadd.f32 %v2280_v4, %v2123_v59  ;;  %v2297_v4 = vadd.f32 %v2296_v38, %v2137_v9  ;;  %v2313_v47 = vadd.f32 %v4867_v13, %v2151_v41 }
 0x511   :  { %v2164_v19 = vpop.f32.mrf.mxu0  ;;  %v2572_v10 = vpop.f32.mrf.mxu1 }
 0x512   :  { %v2165_v54 = vadd.f32 %v2164_v19, %v2009_v36 }
 0x513   :  { %v4877_v16 = vpop.f32.mrf.mxu0  ;;  %v3983_v7 = vpop.f32.mrf.mxu1  ;;  %v5088_v49 = vld [vmem:[#allocation14_spill] sm:$0xff] }
 0x514   :  { %v2329_v13 = vadd.f32 %v4871_v48, %v2165_v54 }
 0x515   :  { %v4879_v29 = vpop.f32.mrf.mxu0  ;;  %v2584_v23 = vpop.f32.mrf.mxu1 }
 0x517   :  { %v3954_v12 = vpop.f32.mrf.mxu0  ;;  %v3986_v51 = vpop.f32.mrf.mxu1 }
 0x518   :  { %v2438_v53 = vadd.f32 %v3954_v12, %v2273_v62  ;;  %v5087_v62 = vld [vmem:[#allocation13_spill] sm:$0xff] }
 0x519   :  { %v2431_v58 = vpop.f32.mrf.mxu0  ;;  %v2596_v24 = vpop.f32.mrf.mxu1 }
 0x51a   :  { %v4881_v31 = vadd.f32 %v3980_v63, %v2438_v53  ;;  %v2432_v3 = vadd.f32 %v2431_v58, %v2265_v2  ;;  %v2172_v53 = vadd.f32 %v3914_v61, %v2015_v17 }
 0x51b   :  { %v3957_v33 = vpop.f32.mrf.mxu0  ;;  %v3989_v50 = vpop.f32.mrf.mxu1 }
 0x51c   :  { %v2450_v1 = vadd.f32 %v3957_v33, %v2289_v18  ;;  %2642 = vrot.lane.b32.xlu0 %v4881_v31, %s4222_s2  ;;  %v2573_v57 = vadd.f32 %v2572_v10, %v2432_v3  ;;  %v2749_v33 = vsel %vm850_vm1, %v4101_v25, 0 }
 0x51d   :  { %v2443_v37 = vpop.f32.mrf.mxu0  ;;  %v2608_v0 = vpop.f32.mrf.mxu1  ;;  %v4936_v9 = vand.u32 4294901760, %v2749_v33 }
 0x51e   :  { %v2591_v6 = vadd.f32 %v3983_v7, %v2450_v1  ;;  %v2444_v39 = vadd.f32 %v2443_v37, %v2281_v21  ;;  %v2095_v7 = vadd.f32 %v4863_v5, %v4843_v11 }
 0x51f   :  { %v3960_v28 = vpop.f32.mrf.mxu0  ;;  %v3992_v20 = vpop.f32.mrf.mxu1  ;;  %v4939_v1 = vsub.f32 %v2749_v33, %v4936_v9  ;;  %4012 = vmatprep.mubr.f32.mxu1 %v4936_v9 }
 0x520   :  { %v2462_v44 = vadd.f32 %v3960_v28, %v2305_v43  ;;  %2648 = vrot.lane.b32.xlu1 %v2591_v6, %s4222_s2  ;;  %2640 = vrot.lane.b32.xlu0 %v2573_v57, %s4222_s2  ;;  %v2585_v32 = vadd.f32 %v2584_v23, %v2444_v39  ;;  %v2426_v23 = vadd.f32 %v4877_v16, %v2257_v8  ;;  %v5089_v16 = vld [vmem:[#allocation15_spill] sm:$0xff] }
 0x521   :  { %v2455_v46 = vpop.f32.mrf.mxu0  ;;  %v2249_v12 = vadd.f32 %v5087_v62, %v2095_v7  ;;  %v2620_v11 = vpop.f32.mrf.mxu1  ;;  %v2825_v34 = vand.u32 4294901760, %v4939_v1 }
 0x522   :  { %v2603_v59 = vadd.f32 %v3986_v51, %v2462_v44  ;;  %v2456_v63 = vadd.f32 %v2455_v46, %v2297_v4  ;;  %v2337_v51 = vadd.f32 %v4869_v45, %v2172_v53  ;;  %v4911_v5 = vadd.f32 %v5088_v49, %v2426_v23 }
 0x523   :  { %v3963_v55 = vpop.f32.mrf.mxu0  ;;  %v2420_v30 = vadd.f32 %v4879_v29, %v2249_v12 }
 0x524   :  { %v2474_v10 = vadd.f32 %v3963_v55, %v2321_v52  ;;  %2654 = vrot.lane.b32.xlu1 %v2603_v59, %s4222_s2  ;;  %2646 = vrot.lane.b32.xlu0 %v2585_v32, %s4222_s2  ;;  %v2597_v15 = vadd.f32 %v2596_v24, %v2456_v63  ;;  %v2826_v24 = vsub.f32 %v4939_v1, %v2825_v34 }
 0x525   :  { %v2467_v38 = vpop.f32.mrf.mxu0  ;;  %v4918_v2 = vadd.f32 %v5089_v16, %v2420_v30 }
 0x526   :  { %v2615_v42 = vadd.f32 %v3989_v50, %v2474_v10  ;;  %v2468_v61 = vadd.f32 %v2467_v38, %v2313_v47  ;;  %v2827_v37 = vand.u32 4294901760, %v2826_v24 }
 0x527   :  { %v3966_v27 = vpop.f32.mrf.mxu0 }
 0x528   :  { %v2486_v19 = vadd.f32 %v3966_v27, %v2337_v51  ;;  %2660 = vrot.lane.b32.xlu1 %v2615_v42, %s4222_s2  ;;  %2652 = vrot.lane.b32.xlu0 %v2597_v15, %s4222_s2  ;;  %v2609_v56 = vadd.f32 %v2608_v0, %v2468_v61 }
 0x529   :  { %v2479_v26 = vpop.f32.mrf.mxu0  ;;  %4001 = vmatprep.mubr.f32.mxu0 %v2827_v37 }
 0x52a   :  { %v2627_v60 = vadd.f32 %v3992_v20, %v2486_v19  ;;  %v2480_v45 = vadd.f32 %v2479_v26, %v2329_v13 }
 0x52c   :  { %2666 = vrot.lane.b32.xlu1 %v2627_v60, %s4222_s2  ;;  %2658 = vrot.lane.b32.xlu0 %v2609_v56, %s4222_s2  ;;  %v2621_v48 = vadd.f32 %v2620_v11, %v2480_v45 }
 0x530   :  { %2634 = vrot.lane.b32.xlu0 %v4911_v5, %s4222_s2  ;;  %2664 = vrot.lane.b32.xlu1 %v2621_v48, %s4222_s2 }
 0x534   :  { %2670 = vrot.lane.b32.xlu0 %v4881_v31, %s4223_s4  ;;  %2632 = vrot.lane.b32.xlu1 %v4918_v2, %s4222_s2 }
 0x538   :  { %2694 = vrot.lane.b32.xlu0 %v2603_v59, %s4225_s30  ;;  %2682 = vrot.lane.b32.xlu1 %v2591_v6, %s4224_s29  ;;  %v4102_v59 = vld [vmem:[#allocation4 + $0x8] sm:$0xff] }
 0x539   :  { %v2752_v63 = vsel %vm850_vm1, %v4102_v59, 0 }
 0x53a   :  { %v4958_v54 = vand.u32 4294901760, %v2752_v63 }
 0x53c   :  { %2680 = vrot.lane.b32.xlu0 %v2585_v32, %s4224_s29  ;;  %2668 = vrot.lane.b32.xlu1 %v2573_v57, %s4223_s4  ;;  %v4966_v51 = vsub.f32 %v2752_v63, %v4958_v54 }
 0x53e   :  { %v2835_v45 = vand.u32 4294901760, %v4966_v51 }
 0x540   :  { %2706 = vrot.lane.b32.xlu1 %v2615_v42, %s4228_s11 }
 0x58e   :  { %v2643_v29 = vpop.permute.xlu0 %2642 }
 0x58f   :  { %2674 = vrot.lane.b32.xlu1 %v2643_v29, %s4223_s4 }
 0x592   :  { %v2649_v14 = vpop.permute.xlu1 %2648  ;;  %v2641_v58 = vpop.permute.xlu0 %2640 }
 0x593   :  { %2672 = vrot.lane.b32.xlu0 %v2641_v58, %s4223_s4 }
 0x596   :  { %v2655_v22 = vpop.permute.xlu1 %2654  ;;  %v2647_v31 = vpop.permute.xlu0 %2646 }
 0x597   :  { %2686 = vrot.lane.b32.xlu0 %v2649_v14, %s4224_s29  ;;  %2698 = vrot.lane.b32.xlu1 %v2655_v22, %s4225_s30 }
 0x59a   :  { %v2661_v3 = vpop.permute.xlu1 %2660  ;;  %v2653_v18 = vpop.permute.xlu0 %2652 }
 0x59b   :  { %2684 = vrot.lane.b32.xlu0 %v2647_v31, %s4224_s29  ;;  %2696 = vrot.lane.b32.xlu1 %v2653_v18, %s4225_s30 }
 0x59e   :  { %v2659_v21 = vpop.permute.xlu0 %2658  ;;  %v2667_v35 = vpop.permute.xlu1 %2666 }
 0x59f   :  { %2708 = vrot.lane.b32.xlu0 %v2659_v21, %s4228_s11  ;;  %2710 = vrot.lane.b32.xlu1 %v2661_v3, %s4228_s11 }
 0x5a2   :  { %v2665_v57 = vpop.permute.xlu1 %2664  ;;  %v2635_v6 = vpop.permute.xlu0 %2634 }
 0x5a3   :  { %2722 = vrot.lane.b32.xlu0 %v2667_v35, %s4227_s10  ;;  %2718 = vrot.lane.b32.xlu1 %v2627_v60, %s4227_s10 }
 0x5a6   :  { %v2633_v39 = vpop.permute.xlu1 %2632  ;;  %v2671_v43 = vpop.permute.xlu0 %2670 }
 0x5a7   :  { %2692 = vrot.lane.b32.xlu0 %v2597_v15, %s4225_s30  ;;  %2720 = vrot.lane.b32.xlu1 %v2665_v57, %s4227_s10  ;;  %v2729_v40 = vsel %vm109_vm0, %v4911_v5, %v2671_v43 }
 0x5aa   :  { %v2683_v17 = vpop.permute.xlu1 %2682  ;;  %v2695_v28 = vpop.permute.xlu0 %2694 }
 0x5ab   :  { %2704 = vrot.lane.b32.xlu0 %v2609_v56, %s4228_s11  ;;  %2716 = vrot.lane.b32.xlu1 %v2621_v48, %s4227_s10  ;;  %v2733_v10 = vsel %vm850_vm1, %v2729_v40, %v2683_v17 }
 0x5ac   :  { %v2737_v15 = vsel %vm1505_vm2, %v2733_v10, %v2695_v28 }
 0x5ae   :  { %v2669_v41 = vpop.permute.xlu1 %2668  ;;  %v2681_v44 = vpop.permute.xlu0 %2680 }
 0x5af   :  { %v2728_v62 = vsel %vm109_vm0, %v4918_v2, %v2669_v41  ;;  %v2836_v2 = vsub.f32 %v4966_v51, %v2835_v45 }
 0x5b0   :  { %v2732_v14 = vsel %vm850_vm1, %v2728_v62, %v2681_v44 }
 0x5b1   :  { %v2837_v57 = vand.u32 4294901760, %v2836_v2 }
 0x5b2   :  { %v2707_v4 = vpop.permute.xlu1 %2706 }
 0x5b3   :  { %v2741_v7 = vsel %vm1508_vm3, %v2737_v15, %v2707_v4 }
 0x601   :  { %v2675_v36 = vpop.permute.xlu1 %2674 }
 0x602   :  { %v2731_v55 = vsel %vm109_vm0, %v2635_v6, %v2675_v36 }
 0x605   :  { %v2673_v50 = vpop.permute.xlu0 %2672 }
 0x606   :  { %v2730_v42 = vsel %vm109_vm0, %v2633_v39, %v2673_v50 }
 0x609   :  { %v2687_v46 = vpop.permute.xlu0 %2686  ;;  %v2699_v52 = vpop.permute.xlu1 %2698 }
 0x60a   :  { %v2735_v47 = vsel %vm850_vm1, %v2731_v55, %v2687_v46 }
 0x60b   :  { %v2739_v61 = vsel %vm1505_vm2, %v2735_v47, %v2699_v52 }
 0x60d   :  { %v2685_v53 = vpop.permute.xlu0 %2684  ;;  %v2697_v32 = vpop.permute.xlu1 %2696 }
 0x60e   :  { %v2734_v27 = vsel %vm850_vm1, %v2730_v42, %v2685_v53 }
 0x60f   :  { %v2738_v60 = vsel %vm1505_vm2, %v2734_v27, %v2697_v32 }
 0x611   :  { %v2709_v0 = vpop.permute.xlu0 %2708  ;;  %v2711_v38 = vpop.permute.xlu1 %2710 }
 0x612   :  { %v2743_v8 = vsel %vm1508_vm3, %v2739_v61, %v2711_v38  ;;  %v2742_v12 = vsel %vm1508_vm3, %v2738_v60, %v2709_v0 }
 0x615   :  { %v2723_v19 = vpop.permute.xlu0 %2722  ;;  %v2719_v13 = vpop.permute.xlu1 %2718 }
 0x616   :  { %v2747_v20 = vsel %vm1511_vm4, %v2743_v8, %v2723_v19  ;;  %v2745_v26 = vsel %vm1511_vm4, %v2741_v7, %v2719_v13 }
 0x617   :  { %v4973_v23 = vand.u32 4294901760, %v2747_v20  ;;  %v4975_v56 = vand.u32 4294901760, %v2745_v26 }
 0x619   :  { %v2869_v11 = vsub.f32 %v2747_v20, %v4973_v23  ;;  %v2883_v49 = vsub.f32 %v2745_v26, %v4975_v56  ;;  %v2693_v5 = vpop.permute.xlu0 %2692  ;;  %3993 = vmatprep.subr.mxu0 %v4973_v23  ;;  %v2721_v30 = vpop.permute.xlu1 %2720 }
 0x61a   :  { %v2746_v48 = vsel %vm1511_vm4, %v2742_v12, %v2721_v30  ;;  %3994 = vmatpush3.msra.mxu0 %v4973_v23  ;;  %v2736_v58 = vsel %vm1505_vm2, %v2732_v14, %v2693_v5  ;;  %v3440_v5 = vld [vmem:[%s5082_s7] ss:$0 sm:$0xff] }
 0x61b   :  { %v4987_v16 = vand.u32 4294901760, %v2746_v48  ;;  %v2870_v29 = vand.u32 4294901760, %v2869_v11  ;;  %v2884_v25 = vand.u32 4294901760, %v2883_v49 }
 0x61d   :  { %v2876_v22 = vsub.f32 %v2746_v48, %v4987_v16  ;;  %v2705_v31 = vpop.permute.xlu0 %2704  ;;  %3995 = vmatprep.subr.mxu0 %v4987_v16  ;;  %v2717_v3 = vpop.permute.xlu1 %2716  ;;  %v2871_v18 = vsub.f32 %v2869_v11, %v2870_v29  ;;  %v2885_v39 = vsub.f32 %v2883_v49, %v2884_v25 }
 0x61e   :  { %v2740_v33 = vsel %vm1508_vm3, %v2736_v58, %v2705_v31  ;;  %3996 = vmatpush3.msra.mxu0 %v4987_v16 }
 0x61f   :  { %v2744_v21 = vsel %vm1511_vm4, %v2740_v33, %v2717_v3  ;;  %3997 = vmatprep.subr.mxu0 %v4975_v56  ;;  %v2872_v35 = vand.u32 4294901760, %v2871_v18  ;;  %v2877_v24 = vand.u32 4294901760, %v2876_v22  ;;  %v2886_v41 = vand.u32 4294901760, %v2885_v39  ;;  %v4103_v3 = vld [vmem:[#allocation2 + $0x18] sm:$0xff]  ;;  %v4104_v33 = vld [vmem:[#allocation2 + $0x10] sm:$0xff] }
 0x620   :  { %v2788_v37 = vand.u32 4294901760, %v2744_v21  ;;  %3998 = vmatpush3.msra.mxu0 %v4975_v56 }
 0x621   :  { %4004 = vmatprep.subr.mxu1 %v2872_v35  ;;  %v2878_v6 = vsub.f32 %v2876_v22, %v2877_v24 }
 0x622   :  { %v2890_v43 = vsub.f32 %v2744_v21, %v2788_v37  ;;  %3999 = vmatprep.subr.mxu0 %v2788_v37  ;;  %4005 = vmatpush3.msra.mxu1 %v2872_v35 }
 0x623   :  { %4000 = vmatpush3.msra.mxu0 %v2788_v37  ;;  %v2879_v17 = vand.u32 4294901760, %v2878_v6 }
 0x624   :  { %4015 = vmatprep.subr.mxu0 %v2869_v11  ;;  %4002 = vmatmul.mubr.f32.vlgmr.msra.gmra.mxu0 %v2837_v57  ;;  %v2891_v28 = vand.u32 4294901760, %v2890_v43 }
 0x625   :  { %4006 = vmatprep.subr.mxu1 %v2879_v17  ;;  %4016 = vmatpush3.msra.mxu0 %v2869_v11 }
 0x626   :  { %4007 = vmatpush3.msra.mxu1 %v2879_v17  ;;  %4017 = vmatprep.subr.mxu0 %v2876_v22  ;;  %v2892_v44 = vsub.f32 %v2890_v43, %v2891_v28  ;;  %v4106_v17 = vld [vmem:[#allocation2 + $0x20] sm:$0xff] }
 0x627   :  { %4008 = vmatprep.subr.mxu1 %v2886_v41  ;;  %4018 = vmatpush3.msra.mxu0 %v2876_v22 }
 0x628   :  { %4009 = vmatpush3.msra.mxu1 %v2886_v41  ;;  %4019 = vmatprep.subr.mxu0 %v2883_v49  ;;  %v2893_v4 = vand.u32 4294901760, %v2892_v44 }
 0x629   :  { %4020 = vmatpush3.msra.mxu0 %v2883_v49  ;;  %4023 = vmatprep.mubr.f32.mxu0 %v4939_v1 }
 0x62a   :  { %4010 = vmatprep.subr.mxu1 %v2893_v4  ;;  %4021 = vmatprep.subr.mxu0 %v2890_v43 }
 0x62b   :  { %4011 = vmatpush3.msra.mxu1 %v2893_v4  ;;  %4022 = vmatpush3.msra.mxu0 %v2890_v43 }
 0x62c   :  { %4026 = vmatprep.subr.mxu1 %v4973_v23  ;;  %4037 = vmatprep.subr.mxu0 %v2870_v29 }
 0x62d   :  { %4013 = vmatmul.mubr.f32.vlgmr.msra.gmra.mxu1 %v4958_v54  ;;  %4024 = vmatmul.mubr.f32.vlgmr.msra.gmra.mxu0 %v4966_v51  ;;  %v3437_v51 = vld [vmem:[%s5081_s6] ss:$0 sm:$0xff] }
 0x62e   :  { %4027 = vmatpush3.msra.mxu1 %v4973_v23  ;;  %4038 = vmatpush3.msra.mxu0 %v2870_v29 }
 0x62f   :  { %4028 = vmatprep.subr.mxu1 %v4987_v16  ;;  %4039 = vmatprep.subr.mxu0 %v2877_v24 }
 0x630   :  { %4029 = vmatpush3.msra.mxu1 %v4987_v16  ;;  %4040 = vmatpush3.msra.mxu0 %v2877_v24 }
 0x631   :  { %4030 = vmatprep.subr.mxu1 %v4975_v56  ;;  %4041 = vmatprep.subr.mxu0 %v2884_v25 }
 0x632   :  { %4031 = vmatpush3.msra.mxu1 %v4975_v56  ;;  %4042 = vmatpush3.msra.mxu0 %v2884_v25 }
 0x633   :  { %4032 = vmatprep.subr.mxu1 %v2788_v37  ;;  %4043 = vmatprep.subr.mxu0 %v2891_v28 }
 0x634   :  { %4033 = vmatpush3.msra.mxu1 %v2788_v37  ;;  %4044 = vmatpush3.msra.mxu0 %v2891_v28 }
 0x635   :  { %4034 = vmatprep.mubr.f32.mxu1 %v2825_v34  ;;  %4048 = vmatprep.subr.mxu1 %v4973_v23 }
 0x636   :  { %4035 = vmatmul.mubr.f32.vlgmr.msra.gmra.mxu1 %v2835_v45  ;;  %4045 = vmatprep.mubr.f32.mxu0 %v4936_v9 }
 0x637   :  { %4049 = vmatpush3.msra.mxu1 %v4973_v23  ;;  %4046 = vmatmul.mubr.f32.vlgmr.msra.gmra.mxu0 %v4958_v54 }
 0x638   :  { %4050 = vmatprep.subr.mxu1 %v4987_v16  ;;  %4056 = vmatprep.mubr.f32.mxu1 %v4936_v9 }
 0x639   :  { %4051 = vmatpush3.msra.mxu1 %v4987_v16 }
 0x63a   :  { %4052 = vmatprep.subr.mxu1 %v4975_v56 }
 0x63b   :  { %4053 = vmatpush3.msra.mxu1 %v4975_v56 }
 0x63c   :  { %4054 = vmatprep.subr.mxu1 %v2788_v37 }
 0x63d   :  { %4055 = vmatpush3.msra.mxu1 %v2788_v37  ;;  %v4105_v37 = vld [vmem:[#allocation2 + $0x28] sm:$0xff] }
 0x63e   :  { %4057 = vmatmul.mubr.f32.vlgmr.msra.gmra.mxu1 %v4958_v54  ;;  %v3436_v54 = vld [vmem:[%s5080_s5] ss:$0 sm:$0xff] }
 0x6e4   :  { %v4003_v1 = vpop.f32.mrf.mxu0 }
 0x6e6   :  { %v2829_v34 = vpop.f32.mrf.mxu0 }
 0x6ed   :  { %v4014_v36 = vpop.f32.mrf.mxu1  ;;  %v4025_v46 = vpop.f32.mrf.mxu0 }
 0x6ee   :  { %v2937_v52 = vadd.f32 %v4014_v36, %v4003_v1 }
 0x6ef   :  { %v2930_v50 = vpop.f32.mrf.mxu1  ;;  %v3016_v32 = vpop.f32.mrf.mxu0 }
 0x6f0   :  { %v2931_v53 = vadd.f32 %v2930_v50, %v2829_v34  ;;  %v3024_v9 = vadd.f32 %v4025_v46, %v2937_v52 }
 0x6f2   :  { %v3017_v55 = vadd.f32 %v3016_v32, %v2931_v53 }
 0x6f6   :  { %v4036_v59 = vpop.f32.mrf.mxu1 }
 0x6f7   :  { %v4047_v40 = vpop.f32.mrf.mxu0  ;;  %v3109_v10 = vadd.f32 %v4036_v59, %v3024_v9 }
 0x6f8   :  { %v3100_v63 = vpop.f32.mrf.mxu1 }
 0x6f9   :  { %v3101_v47 = vadd.f32 %v3100_v63, %v3017_v55  ;;  %v3191_v0 = vpop.f32.mrf.mxu0  ;;  %v3198_v38 = vadd.f32 %v4047_v40, %v3109_v10 }
 0x6fb   :  { %v3192_v42 = vadd.f32 %v3191_v0, %v3101_v47 }
 0x6fe   :  { %v4058_v15 = vpop.f32.mrf.mxu1 }
 0x6ff   :  { %v3279_v61 = vadd.f32 %v4058_v15, %v3198_v38 }
 0x700   :  { %v3272_v7 = vpop.f32.mrf.mxu1 }
 0x701   :  { %v3290_v27 = vsub.f32 %v3279_v61, %v3436_v54  ;;  %v3273_v8 = vadd.f32 %v3272_v7, %v3192_v42 }
 0x703   :  { %v3299_v19 = vmul.f32 %v3437_v51, %v3290_v27  ;;  %v3289_v13 = vsub.f32 %v3273_v8, %v3436_v54  ;;  %v4107_v8 = vld [vmem:[#allocation2 + $0x8] sm:$0xff] }
 0x705   :  { %v3302_v20 = vmul.f32 -0.5, %v3299_v19  ;;  %v3298_v26 = vmul.f32 %v3437_v51, %v3289_v13 }
 0x707   :  { %v3304_v23 = vmul.f32 %v3302_v20, %v3299_v19  ;;  %v3301_v56 = vmul.f32 -0.5, %v3298_v26 }
 0x709   :  { %v3307_v60 = vmul.f32 1.442695, %v3304_v23  ;;  %v3303_v45 = vmul.f32 %v3301_v56, %v3298_v26  ;;  %v4108_v26 = vld [vmem:[#allocation2] sm:$0xff] }
 0x70b   :  { %4073 = vpow2.f32 %v3307_v60  ;;  %v3305_v62 = vmul.f32 1.442695, %v3303_v45 }
 0x70d   :  { %4075 = vpow2.f32 %v3305_v62 }
 0x718   :  { %v4074_v12 = vpop.eup %4073 }
 0x719   :  { %v3310_v11 = vmul.f32 2.0, %v4074_v12 }
 0x71a   :  { %v4076_v49 = vpop.eup %4075 }
 0x71b   :  { %v3439_v30 = vadd.f32 -1.0, %v3310_v11  ;;  %v3309_v48 = vmul.f32 2.0, %v4076_v49 }
 0x71d   :  { %v5033_v16 = vmul.f32 %v3440_v5, %v3439_v30  ;;  %v3438_v29 = vadd.f32 -1.0, %v3309_v48 }
 0x71f   :  { %v5035_v14 = vmul.f32 %v3440_v5, %v3438_v29  ;;  %3349 = vrot.lane.b32.xlu1 %v5033_v16, %s4222_s2  ;;  %v3322_v19 = vadd.f32 %v4107_v8, %v5033_v16 }
 0x721   :  { %3347 = vrot.lane.b32.xlu0 %v5035_v14, %s4222_s2  ;;  %v3321_v23 = vadd.f32 %v4108_v26, %v5035_v14 }
 0x723   :  { %3379 = vrot.lane.b32.xlu1 %v5033_v16, %s4227_s10 }
 0x725   :  { %3377 = vrot.lane.b32.xlu0 %v5035_v14, %s4227_s10 }
 0x727   :  { %3357 = vrot.lane.b32.xlu1 %v5033_v16, %s4228_s11 }
 0x729   :  { %3355 = vrot.lane.b32.xlu0 %v5035_v14, %s4228_s11 }
 0x72b   :  { %3387 = vrot.lane.b32.xlu1 %v5033_v16, %s4225_s30 }
 0x72d   :  { %3385 = vrot.lane.b32.xlu0 %v5035_v14, %s4225_s30 }
 0x72f   :  { %3327 = vrot.lane.b32.xlu1 %v5033_v16, %s4226_s9 }
 0x731   :  { %3325 = vrot.lane.b32.xlu0 %v5035_v14, %s4226_s9 }
 0x791   :  { %v3350_v2 = vpop.permute.xlu1 %3349 }
 0x792   :  { %v3354_v18 = vadd.f32 %v4103_v3, %v3350_v2 }
 0x793   :  { %v3348_v58 = vpop.permute.xlu0 %3347 }
 0x794   :  { %v3353_v21 = vadd.f32 %v4104_v33, %v3348_v58 }
 0x795   :  { %v3380_v22 = vpop.permute.xlu1 %3379 }
 0x796   :  { %v3384_v57 = vadd.f32 %v4105_v37, %v3380_v22 }
 0x797   :  { %v3378_v31 = vpop.permute.xlu0 %3377 }
 0x798   :  { %v3383_v28 = vadd.f32 %v4106_v17, %v3378_v31 }
 0x799   :  { %v3358_v25 = vpop.permute.xlu1 %3357 }
 0x79a   :  { %v3362_v35 = vadd.f32 %v3358_v25, %v3354_v18 }
 0x79b   :  { %v3356_v24 = vpop.permute.xlu0 %3355 }
 0x79c   :  { %v3444_v6 = vadd.f32 -0.5, %v3362_v35  ;;  %v3361_v39 = vadd.f32 %v3356_v24, %v3353_v21 }
 0x79d   :  { %v3388_v43 = vpop.permute.xlu1 %3387 }
 0x79e   :  { %v3366_v41 = vmul.f32 -4.0, %v3444_v6  ;;  %v3443_v44 = vadd.f32 -0.5, %v3361_v39  ;;  %v3392_v4 = vadd.f32 %v3388_v43, %v3384_v57 }
 0x79f   :  { %v3386_v1 = vpop.permute.xlu0 %3385 }
 0x7a0   :  { %v3369_v34 = vmul.f32 1.442695, %v3366_v41  ;;  %v3365_v36 = vmul.f32 -4.0, %v3443_v44  ;;  %v3446_v50 = vadd.f32 -0.5, %v3392_v4  ;;  %v3391_v46 = vadd.f32 %v3386_v1, %v3383_v28 }
 0x7a1   :  { %v3328_v27 = vpop.permute.xlu1 %3327 }
 0x7a2   :  { %4077 = vpow2.f32 %v3369_v34  ;;  %v3367_v52 = vmul.f32 1.442695, %v3365_v36  ;;  %v3396_v53 = vmul.f32 -4.0, %v3446_v50  ;;  %v3445_v32 = vadd.f32 -0.5, %v3391_v46 }
 0x7a3   :  { %v3326_v13 = vpop.permute.xlu0 %3325  ;;  %v3332_v20 = vadd.f32 %v3328_v27, %v3322_v19 }
 0x7a4   :  { %4079 = vpow2.f32 %v3367_v52  ;;  %v3399_v59 = vmul.f32 1.442695, %v3396_v53  ;;  %v3395_v9 = vmul.f32 -4.0, %v3445_v32  ;;  %v3331_v56 = vadd.f32 %v3326_v13, %v3321_v23 }
 0x7a5   :  { %v3442_v60 = vadd.f32 -0.5, %v3332_v20 }
 0x7a6   :  { %4081 = vpow2.f32 %v3399_v59  ;;  %v3397_v63 = vmul.f32 1.442695, %v3395_v9  ;;  %v3441_v45 = vadd.f32 -0.5, %v3331_v56 }
 0x7a7   :  { %v3336_v62 = vmul.f32 -4.0, %v3442_v60 }
 0x7a8   :  { %4083 = vpow2.f32 %v3397_v63  ;;  %v3335_v12 = vmul.f32 -4.0, %v3441_v45 }
 0x7a9   :  { %v3339_v11 = vmul.f32 1.442695, %v3336_v62 }
 0x7aa   :  { %v3337_v49 = vmul.f32 1.442695, %v3335_v12 }
 0x7af   :  { %v4078_v40 = vpop.eup %4077 }
 0x7b0   :  { %v3372_v55 = vadd.f32 1.0, %v4078_v40 }
 0x7b1   :  { %v4080_v10 = vpop.eup %4079 }
 0x7b2   :  { %4085 = vrcp.f32 %v3372_v55  ;;  %v3371_v47 = vadd.f32 1.0, %v4080_v10 }
 0x7b3   :  { %v4082_v0 = vpop.eup %4081 }
 0x7b4   :  { %4087 = vrcp.f32 %v3371_v47  ;;  %v3402_v38 = vadd.f32 1.0, %v4082_v0 }
 0x7b5   :  { %v4084_v15 = vpop.eup %4083 }
 0x7b6   :  { %4089 = vrcp.f32 %v3402_v38  ;;  %v3401_v54 = vadd.f32 1.0, %v4084_v15 }
 0x7b8   :  { %4091 = vrcp.f32 %v3401_v54 }
 0x7b9   :  { %4093 = vpow2.f32 %v3339_v11 }
 0x7ba   :  { %4095 = vpow2.f32 %v3337_v49 }
 0x7bf   :  { %v4086_v42 = vpop.eup %4085 }
 0x7c0   :  { %3411 = vrot.lane.b32.xlu1 %v4086_v42, %s4223_s4 }
 0x7c1   :  { %v4088_v61 = vpop.eup %4087 }
 0x7c2   :  { %3409 = vrot.lane.b32.xlu0 %v4088_v61, %s4223_s4 }
 0x7c3   :  { %v4090_v51 = vpop.eup %4089 }
 0x7c4   :  { %3419 = vrot.lane.b32.xlu1 %v4090_v51, %s4224_s29 }
 0x7c5   :  { %v4092_v7 = vpop.eup %4091 }
 0x7c6   :  { %3417 = vrot.lane.b32.xlu0 %v4092_v7, %s4224_s29  ;;  %v4094_v5 = vpop.eup %4093 }
 0x7c7   :  { %v4096_v30 = vpop.eup %4095  ;;  %v3342_v48 = vadd.f32 1.0, %v4094_v5 }
 0x7c8   :  { %v3341_v29 = vadd.f32 1.0, %v4096_v30 }
 0x7c9   :  { %4097 = vrcp.f32 %v3342_v48 }
 0x7ca   :  { %4099 = vrcp.f32 %v3341_v29 }
 0x7d6   :  { %v4098_v58 = vpop.eup %4097 }
 0x7d7   :  { %v4100_v31 = vpop.eup %4099 }
 0x832   :  { %v3412_v16 = vpop.permute.xlu1 %3411 }
 0x833   :  { %v3424_v14 = vsel %vm109_vm0, %v4098_v58, %v3412_v16 }
 0x834   :  { %v3410_v2 = vpop.permute.xlu0 %3409 }
 0x835   :  { %v3423_v18 = vsel %vm109_vm0, %v4100_v31, %v3410_v2 }
 0x836   :  { %v3420_v22 = vpop.permute.xlu1 %3419 }
 0x837   :  { %v3426_v3 = vsel %vm850_vm1, %v3424_v14, %v3420_v22 }
 0x838   :  { %3428 = vst.msk [vmem:[%s5083_s8 + $0x8] sm:$0xff] %vm1505_vm2, %v3426_v3  ;;  %v3418_v25 = vpop.permute.xlu0 %3417 }
 0x839   :  { %v3425_v33 = vsel %vm850_vm1, %v3423_v18, %v3418_v25 }
 0x83a   :  { %3427 = vst.msk [vmem:[%s5083_s8] sm:$0xff] %vm1505_vm2, %v3425_v33 }
 0x83b   :  { %3433 = vsyncpa [#allocation3], 1 }
 0x83c   :  { %3434 = vsyncpa [#allocation5], 1 }
 0x83d   :  { %3435 = vsyncpa [#allocation8], 1 }

</bundles_post_ra>
